<compile_context>
chip_gen: v7x
topology: tpu7x:2x2x1
jax: 0.10.0
libtpu: 0.0.40
codegen_flags: <defaults>
</compile_context>

<pallas_src>
import functools
import math

import jax
import jax.numpy as jnp
from jax.experimental import pallas as pl
from jax.experimental.pallas import tpu as pltpu


_VMEM_LIMIT = 48 * 1024 * 1024   # explicit ceiling; safe on v5e/v6e/v7x
_CPARAMS_B = pltpu.CompilerParams(
    dimension_semantics=("parallel",), vmem_limit_bytes=_VMEM_LIMIT)
_CPARAMS_BH = pltpu.CompilerParams(
    dimension_semantics=("parallel", "parallel"), vmem_limit_bytes=_VMEM_LIMIT)

_LN_EPS = 1e-5
_GELU_C = math.sqrt(2.0 / math.pi)


# ----------------------------------------------------------------------------
# Shared math helpers (pure jnp; used both inside kernels and in the reference)
# ----------------------------------------------------------------------------
def _layernorm(x, gamma, beta):
    mu = jnp.mean(x, axis=-1, keepdims=True)
    xc = x - mu
    var = jnp.mean(xc * xc, axis=-1, keepdims=True)
    return xc * jax.lax.rsqrt(var + _LN_EPS) * gamma + beta


def _gelu_tanh(x):
    # Matches nn.GELU(approximate='tanh')
    return 0.5 * x * (1.0 + jnp.tanh(_GELU_C * (x + 0.044715 * x * x * x)))


# ----------------------------------------------------------------------------
# Kernels
# ----------------------------------------------------------------------------
def ln_qkv_kernel(x_ref, g_ref, b_ref, w_ref, wb_ref, o_ref):
    """LayerNorm + QKV projection.  x:(1,T,C) -> qkv:(1,T,3C) (bf16)."""
    x = x_ref[0].astype(jnp.float32)                              # (T, C)
    xn = _layernorm(x, g_ref[...], b_ref[...])
    qkv = jnp.dot(xn.astype(jnp.bfloat16), w_ref[...],            # bf16 MXU
                  preferred_element_type=jnp.float32) + wb_ref[...]
    o_ref[0] = qkv.astype(o_ref.dtype)


def attn_kernel(q_ref, k_ref, v_ref, o_ref, *, scale):
    """Causal softmax attention for one (batch, head) grid point.

    q/k/v blocks: (T, hd) in bfloat16; output (T, hd) in float32.
    """
    q = q_ref[...]
    k = k_ref[...]
    v = v_ref[...]
    T = q.shape[0]

    # Scores: contract the last dims of Q and K (no explicit K transpose).
    s = jax.lax.dot_general(
        q, k, dimension_numbers=(((1,), (1,)), ((), ())),
        preferred_element_type=jnp.float32) * scale               # (T, T) f32

    rows = jax.lax.broadcasted_iota(jnp.int32, (T, T), 0)
    cols = jax.lax.broadcasted_iota(jnp.int32, (T, T), 1)
    s = jnp.where(rows >= cols, s, jnp.float32(-1e30))            # finite mask

    m = jnp.max(s, axis=-1, keepdims=True)
    p = jnp.exp(s - m)
    p = p * pl.reciprocal(jnp.sum(p, axis=-1, keepdims=True), approx=True)

    o_ref[...] = jnp.dot(p.astype(v.dtype), v,
                         preferred_element_type=jnp.float32).astype(o_ref.dtype)


def proj_mlp_kernel(x_ref, y_ref, wp_ref, bp_ref, g2_ref, b2_ref,
                    wf_ref, bf_ref, wm_ref, bm_ref, o_ref):
    """Attention output projection + residual, then LN2 + MLP + residual."""
    x = x_ref[0].astype(jnp.float32)                              # (T, C)
    y = y_ref[0].astype(jnp.bfloat16)                             # merged heads

    attn_out = jnp.dot(y, wp_ref[...],
                       preferred_element_type=jnp.float32) + bp_ref[...]
    x1 = x + attn_out

    xn2 = _layernorm(x1, g2_ref[...], b2_ref[...])
    h = jnp.dot(xn2.astype(jnp.bfloat16), wf_ref[...],
                preferred_element_type=jnp.float32) + bf_ref[...]
    h = _gelu_tanh(h)
    out = x1 + jnp.dot(h.astype(jnp.bfloat16), wm_ref[...],
                       preferred_element_type=jnp.float32) + bm_ref[...]
    o_ref[0] = out.astype(o_ref.dtype)


def lnf_head_kernel(x_ref, g_ref, b_ref, wte_ref, o_ref):
    """Final LayerNorm + tied lm_head (logits = ln_f(x) @ wte.T)."""
    x = x_ref[0].astype(jnp.float32)                              # (T, C)
    xn = _layernorm(x, g_ref[...], b_ref[...])
    # Contract the last dims (wte is (V, C)) -> no explicit transpose.
    logits = jax.lax.dot_general(
        xn.astype(jnp.bfloat16), wte_ref[...],
        dimension_numbers=(((1,), (1,)), ((), ())),
        preferred_element_type=jnp.float32)                       # (T, V)
    o_ref[0] = logits.astype(o_ref.dtype)


# ----------------------------------------------------------------------------
# Wrappers (pallas_call plumbing)
# ----------------------------------------------------------------------------
def _ln_qkv(x, g, b, w_attn, b_attn):
    B, T, C = x.shape
    return pl.pallas_call(
        ln_qkv_kernel,
        out_shape=jax.ShapeDtypeStruct((B, T, 3 * C), jnp.bfloat16),
        grid_spec=pltpu.PrefetchScalarGridSpec(
            num_scalar_prefetch=0, grid=(B,),
            in_specs=[
                pl.BlockSpec((1, T, C), lambda i: (i, 0, 0)),
                pl.BlockSpec((1, C), lambda i: (0, 0)),
                pl.BlockSpec((1, C), lambda i: (0, 0)),
                pl.BlockSpec((C, 3 * C), lambda i: (0, 0)),
                pl.BlockSpec((1, 3 * C), lambda i: (0, 0)),
            ],
            out_specs=pl.BlockSpec((1, T, 3 * C), lambda i: (i, 0, 0))),
        compiler_params=_CPARAMS_B,
    )(x, g, b, w_attn.astype(jnp.bfloat16), b_attn)


def _attention(q, k, v):
    B, H, T, hd = q.shape
    spec = pl.BlockSpec((None, None, T, hd), lambda i, h: (i, h, 0, 0))
    return pl.pallas_call(
        functools.partial(attn_kernel, scale=1.0 / math.sqrt(hd)),
        out_shape=jax.ShapeDtypeStruct((B, H, T, hd), jnp.float32),
        grid_spec=pltpu.PrefetchScalarGridSpec(
            num_scalar_prefetch=0, grid=(B, H),
            in_specs=[spec, spec, spec],
            out_specs=pl.BlockSpec((None, None, T, hd),
                                   lambda i, h: (i, h, 0, 0))),
        compiler_params=_CPARAMS_BH,
    )(q, k, v)


def _proj_mlp(x, y, w_ap, b_ap, g2, b2, w_fc, b_fc, w_mp, b_mp):
    B, T, C = x.shape
    return pl.pallas_call(
        proj_mlp_kernel,
        out_shape=jax.ShapeDtypeStruct((B, T, C), x.dtype),
        grid_spec=pltpu.PrefetchScalarGridSpec(
            num_scalar_prefetch=0, grid=(B,),
            in_specs=[
                pl.BlockSpec((1, T, C), lambda i: (i, 0, 0)),   # x (residual)
                pl.BlockSpec((1, T, C), lambda i: (i, 0, 0)),   # merged heads
                pl.BlockSpec((C, C), lambda i: (0, 0)),
                pl.BlockSpec((1, C), lambda i: (0, 0)),
                pl.BlockSpec((1, C), lambda i: (0, 0)),
                pl.BlockSpec((1, C), lambda i: (0, 0)),
                pl.BlockSpec((C, 4 * C), lambda i: (0, 0)),
                pl.BlockSpec((1, 4 * C), lambda i: (0, 0)),
                pl.BlockSpec((4 * C, C), lambda i: (0, 0)),
                pl.BlockSpec((1, C), lambda i: (0, 0)),
            ],
            out_specs=pl.BlockSpec((1, T, C), lambda i: (i, 0, 0))),
        compiler_params=_CPARAMS_B,
    )(x, y, w_ap.astype(jnp.bfloat16), b_ap, g2, b2,
      w_fc.astype(jnp.bfloat16), b_fc, w_mp.astype(jnp.bfloat16), b_mp)


def _lnf_lm_head(x, g, b, wte):
    B, T, C = x.shape
    V = wte.shape[0]
    return pl.pallas_call(
        lnf_head_kernel,
        out_shape=jax.ShapeDtypeStruct((B, T, V), jnp.float32),
        grid_spec=pltpu.PrefetchScalarGridSpec(
            num_scalar_prefetch=0, grid=(B,),
            in_specs=[
                pl.BlockSpec((1, T, C), lambda i: (i, 0, 0)),
                pl.BlockSpec((1, C), lambda i: (0, 0)),
                pl.BlockSpec((1, C), lambda i: (0, 0)),
                pl.BlockSpec((V, C), lambda i: (0, 0)),
            ],
            out_specs=pl.BlockSpec((1, T, V), lambda i: (i, 0, 0))),
        compiler_params=_CPARAMS_B,
    )(x, g, b, wte.astype(jnp.bfloat16))


def gpt_block(x, layer_params, n_head):
    """One transformer block: x + attn(ln1(x)); x + mlp(ln2(x))."""
    B, T, C = x.shape
    hd = C // n_head
    (ln1_g, ln1_b, w_attn, b_attn, w_ap, b_ap,
     ln2_g, ln2_b, w_fc, b_fc, w_mp, b_mp) = layer_params

    qkv = _ln_qkv(x, ln1_g, ln1_b, w_attn, b_attn)                # (B,T,3C) bf16

    # Head split = layout plumbing; keep it outside the kernels.
    q, k, v = jnp.split(qkv, 3, axis=-1)
    def to_heads(t):
        return t.reshape(B, T, n_head, hd).transpose(0, 2, 1, 3)  # (B,H,T,hd)
    y = _attention(to_heads(q), to_heads(k), to_heads(v))         # (B,H,T,hd)
    y = y.transpose(0, 2, 1, 3).reshape(B, T, C)                  # lane-dense

    return _proj_mlp(x, y, w_ap, b_ap, ln2_g, ln2_b, w_fc, b_fc, w_mp, b_mp)


def gpt_forward(idx, params, n_head):
    """GPT forward (targets=None path): token ids (B, T) -> logits (B, T, V)."""
    wte, wpe = params["wte"], params["wpe"]
    T = idx.shape[1]
    # Embedding gather stays in plain JAX (no clean rectangular BlockSpec).
    x = jnp.take(wte, idx, axis=0) + wpe[:T]
    for layer_params in params["layers"]:
        x = gpt_block(x, layer_params, n_head)
    return _lnf_lm_head(x, params["lnf_g"], params["lnf_b"], wte)


# ----------------------------------------------------------------------------
# Pure-JAX float32 reference mirroring the PyTorch module
# ----------------------------------------------------------------------------
def reference_gpt(idx, params, n_head):
    wte, wpe = params["wte"], params["wpe"]
    B, T = idx.shape
    C = wte.shape[1]
    hd = C // n_head
    x = wte[idx] + wpe[:T]
    for (ln1_g, ln1_b, w_attn, b_attn, w_ap, b_ap,
         ln2_g, ln2_b, w_fc, b_fc, w_mp, b_mp) in params["layers"]:
        xn = _layernorm(x, ln1_g, ln1_b)
        qkv = xn @ w_attn + b_attn
        q, k, v = jnp.split(qkv, 3, axis=-1)
        def heads(t):
            return t.reshape(B, T, n_head, hd).transpose(0, 2, 1, 3)
        q, k, v = heads(q), heads(k), heads(v)
        s = jnp.einsum("bhqd,bhkd->bhqk", q, k) / math.sqrt(hd)
        mask = jnp.tril(jnp.ones((T, T), dtype=bool))
        s = jnp.where(mask[None, None], s, -jnp.inf)
        p = jax.nn.softmax(s, axis=-1)
        y = jnp.einsum("bhqk,bhkd->bhqd", p, v)
        y = y.transpose(0, 2, 1, 3).reshape(B, T, C)
        x = x + (y @ w_ap + b_ap)
        xn2 = _layernorm(x, ln2_g, ln2_b)
        x = x + (_gelu_tanh(xn2 @ w_fc + b_fc) @ w_mp + b_mp)
    xn = _layernorm(x, params["lnf_g"], params["lnf_b"])
    return xn @ wte.T


# ----------------------------------------------------------------------------
# Test driver
# ----------------------------------------------------------------------------
if __name__ == "__main__":
    # Small GPT config: 2 layers, 4 heads, n_embd=128 (hd=32), T=32, vocab=256.
    B, T = 2, 32
    n_layer, n_head, C = 2, 4, 128
    V, block_size = 256, 64

    key = jax.random.PRNGKey(0)
    k_idx, k_wte, k_wpe, k_lnfg, k_lnfb, *layer_keys = jax.random.split(
        key, 5 + n_layer)

    def nrm(k, shape, std=0.02):
        return jax.random.normal(k, shape, dtype=jnp.float32) * std

    layers = []
    for lk in layer_keys:
        ks = jax.random.split(lk, 12)
        layers.append((
            1.0 + nrm(ks[0], (1, C), 0.1),    # ln1 gamma
            nrm(ks[1], (1, C), 0.1),          # ln1 beta
            nrm(ks[2], (C, 3 * C)),           # W_attn  [in, out]
            nrm(ks[3], (1, 3 * C)),           # b_attn
            nrm(ks[4], (C, C)),               # W_attn_proj
            nrm(ks[5], (1, C)),               # b_attn_proj
            1.0 + nrm(ks[6], (1, C), 0.1),    # ln2 gamma
            nrm(ks[7], (1, C), 0.1),          # ln2 beta
            nrm(ks[8], (C, 4 * C)),           # W_fc
            nrm(ks[9], (1, 4 * C)),           # b_fc
            nrm(ks[10], (4 * C, C)),          # W_mlp_proj
            nrm(ks[11], (1, C)),              # b_mlp_proj
        ))

    params = dict(
        wte=nrm(k_wte, (V, C)),               # tied embedding / lm_head weight
        wpe=nrm(k_wpe, (block_size, C)),
        lnf_g=1.0 + nrm(k_lnfg, (1, C), 0.1),
        lnf_b=nrm(k_lnfb, (1, C), 0.1),
        layers=layers,
    )

    idx = jax.random.randint(k_idx, (B, T), 0, V)

    gpt = jax.jit(functools.partial(gpt_forward, n_head=n_head))
    logits = jax.block_until_ready(gpt(idx, params))

    ref = reference_gpt(idx, params, n_head)
    assert logits.shape == (B, T, V)
    max_err = float(jnp.max(jnp.abs(logits - ref)))
    # bf16 MXU operands (f32 accumulation / softmax) => relaxed tolerance.
    assert jnp.allclose(logits, ref, atol=5e-2, rtol=5e-2), (
        f"mismatch vs reference, max abs err = {max_err}")

    print("KERNEL_OK")
</pallas_src>

<mosaic_0001>
module attributes {stable_mosaic.version = 11 : i64} {
  func.func @ln_qkv_kernel(%arg0: i32, %arg1: memref<1x32x128xf32, #tpu.memory_space<vmem>>, %arg2: memref<1x128xf32, #tpu.memory_space<vmem>>, %arg3: memref<1x128xf32, #tpu.memory_space<vmem>>, %arg4: memref<128x384xbf16, #tpu.memory_space<vmem>>, %arg5: memref<1x384xf32, #tpu.memory_space<vmem>>, %arg6: memref<1x32x384xbf16, #tpu.memory_space<vmem>>) attributes {dimension_semantics = [#tpu.dimension_semantics<parallel>], iteration_bounds = array<i64: 2>, scalar_prefetch = 0 : i64, scratch_operands = 0 : i64, tpu.core_type = #tpu.core_type<tc>, window_params = [{transform_indices = @transform_0, window_bounds = array<i64: 1, 32, 128>}, {pipeline_mode = #tpu.pipeline_mode<synchronous>, transform_indices = @transform_1, window_bounds = array<i64: 1, 128>}, {pipeline_mode = #tpu.pipeline_mode<synchronous>, transform_indices = @transform_2, window_bounds = array<i64: 1, 128>}, {pipeline_mode = #tpu.pipeline_mode<synchronous>, transform_indices = @transform_3, window_bounds = array<i64: 128, 384>}, {pipeline_mode = #tpu.pipeline_mode<synchronous>, transform_indices = @transform_4, window_bounds = array<i64: 1, 384>}, {transform_indices = @transform_5, window_bounds = array<i64: 1, 32, 384>}]} {
    %c0 = arith.constant 0 : index
    %c0_0 = arith.constant 0 : index
    %c0_1 = arith.constant 0 : index
    %0 = vector.load %arg1[%c0, %c0_0, %c0_1] : memref<1x32x128xf32, #tpu.memory_space<vmem>>, vector<1x32x128xf32>
    %1 = vector.shape_cast %0 : vector<1x32x128xf32> to vector<32x128xf32>
    %c0_2 = arith.constant 0 : index
    %c0_3 = arith.constant 0 : index
    %2 = vector.load %arg2[%c0_2, %c0_3] : memref<1x128xf32, #tpu.memory_space<vmem>>, vector<1x128xf32>
    %c0_4 = arith.constant 0 : index
    %c0_5 = arith.constant 0 : index
    %3 = vector.load %arg3[%c0_4, %c0_5] : memref<1x128xf32, #tpu.memory_space<vmem>>, vector<1x128xf32>
    %cst = arith.constant dense<0.000000e+00> : vector<32xf32>
    %4 = vector.multi_reduction <add>, %1, %cst [1] : vector<32x128xf32> to vector<32xf32>
    %5 = vector.shape_cast %4 : vector<32xf32> to vector<32x1xf32>
    %cst_6 = arith.constant 1.280000e+02 : f32
    %6 = vector.broadcast %cst_6 : f32 to vector<32x1xf32>
    %7 = arith.divf %5, %6 : vector<32x1xf32>
    %8 = vector.broadcast %7 : vector<32x1xf32> to vector<32x128xf32>
    %9 = arith.subf %1, %8 : vector<32x128xf32>
    %10 = arith.mulf %9, %9 : vector<32x128xf32>
    %cst_7 = arith.constant dense<0.000000e+00> : vector<32xf32>
    %11 = vector.multi_reduction <add>, %10, %cst_7 [1] : vector<32x128xf32> to vector<32xf32>
    %12 = vector.shape_cast %11 : vector<32xf32> to vector<32x1xf32>
    %cst_8 = arith.constant 1.280000e+02 : f32
    %13 = vector.broadcast %cst_8 : f32 to vector<32x1xf32>
    %14 = arith.divf %12, %13 : vector<32x1xf32>
    %cst_9 = arith.constant 9.99999974E-6 : f32
    %15 = vector.broadcast %cst_9 : f32 to vector<32x1xf32>
    %16 = arith.addf %14, %15 : vector<32x1xf32>
    %17 = math.rsqrt %16 : vector<32x1xf32>
    %18 = vector.broadcast %17 : vector<32x1xf32> to vector<32x128xf32>
    %19 = arith.mulf %9, %18 : vector<32x128xf32>
    %20 = vector.broadcast %2 : vector<1x128xf32> to vector<32x128xf32>
    %21 = arith.mulf %19, %20 : vector<32x128xf32>
    %22 = vector.broadcast %3 : vector<1x128xf32> to vector<32x128xf32>
    %23 = arith.addf %21, %22 : vector<32x128xf32>
    %24 = arith.truncf %23 : vector<32x128xf32> to vector<32x128xbf16>
    %c0_10 = arith.constant 0 : index
    %c0_11 = arith.constant 0 : index
    %25 = vector.load %arg4[%c0_10, %c0_11] : memref<128x384xbf16, #tpu.memory_space<vmem>>, vector<128x384xbf16>
    %cst_12 = arith.constant dense<0.000000e+00> : vector<32x384xf32>
    %26 = tpu.matmul %24, %25, %cst_12 {dimension_numbers = #tpu.dot_dimension_numbers<[1], [0], [0], [1], [0, 0, 1, 1], [], []>} : vector<32x128xbf16>, vector<128x384xbf16>, vector<32x384xf32> -> vector<32x384xf32>
    %c0_13 = arith.constant 0 : index
    %c0_14 = arith.constant 0 : index
    %27 = vector.load %arg5[%c0_13, %c0_14] : memref<1x384xf32, #tpu.memory_space<vmem>>, vector<1x384xf32>
    %28 = vector.broadcast %27 : vector<1x384xf32> to vector<32x384xf32>
    %29 = arith.addf %26, %28 : vector<32x384xf32>
    %30 = arith.truncf %29 : vector<32x384xf32> to vector<32x384xbf16>
    %c0_15 = arith.constant 0 : index
    %c0_16 = arith.constant 0 : index
    %c0_17 = arith.constant 0 : index
    %31 = vector.load %arg6[%c0_15, %c0_16, %c0_17] : memref<1x32x384xbf16, #tpu.memory_space<vmem>>, vector<1x32x384xbf16>
    %32 = vector.shape_cast %31 : vector<1x32x384xbf16> to vector<32x384xbf16>
    %33 = vector.shape_cast %30 : vector<32x384xbf16> to vector<1x32x384xbf16>
    tpu.vector_store %arg6[%c0_15, %c0_16, %c0_17], %33 {strides = array<i32>} : memref<1x32x384xbf16, #tpu.memory_space<vmem>>, vector<1x32x384xbf16>,
    return
  }
  func.func @transform_0(%arg0: i32) -> (i32, i32, i32) {
    %c0_i32 = arith.constant 0 : i32
    %c0_i32_0 = arith.constant 0 : i32
    %c0_i32_1 = arith.constant 0 : i32
    return %arg0, %c0_i32, %c0_i32_0 : i32, i32, i32
  }
  func.func @transform_1(%arg0: i32) -> (i32, i32) {
    %c0_i32 = arith.constant 0 : i32
    %c0_i32_0 = arith.constant 0 : i32
    %c0_i32_1 = arith.constant 0 : i32
    return %c0_i32, %c0_i32_0 : i32, i32
  }
  func.func @transform_2(%arg0: i32) -> (i32, i32) {
    %c0_i32 = arith.constant 0 : i32
    %c0_i32_0 = arith.constant 0 : i32
    %c0_i32_1 = arith.constant 0 : i32
    return %c0_i32, %c0_i32_0 : i32, i32
  }
  func.func @transform_3(%arg0: i32) -> (i32, i32) {
    %c0_i32 = arith.constant 0 : i32
    %c0_i32_0 = arith.constant 0 : i32
    %c0_i32_1 = arith.constant 0 : i32
    return %c0_i32, %c0_i32_0 : i32, i32
  }
  func.func @transform_4(%arg0: i32) -> (i32, i32) {
    %c0_i32 = arith.constant 0 : i32
    %c0_i32_0 = arith.constant 0 : i32
    %c0_i32_1 = arith.constant 0 : i32
    return %c0_i32, %c0_i32_0 : i32, i32
  }
  func.func @transform_5(%arg0: i32) -> (i32, i32, i32) {
    %c0_i32 = arith.constant 0 : i32
    %c0_i32_0 = arith.constant 0 : i32
    %c0_i32_1 = arith.constant 0 : i32
    return %arg0, %c0_i32, %c0_i32_0 : i32, i32, i32
  }
}

module attributes {stable_mosaic.version = 11 : i64} {
  func.func @attn_kernel(%arg0: i32, %arg1: i32, %arg2: memref<1x1x32x32xbf16, #tpu.memory_space<vmem>>, %arg3: memref<1x1x32x32xbf16, #tpu.memory_space<vmem>>, %arg4: memref<1x1x32x32xbf16, #tpu.memory_space<vmem>>, %arg5: memref<1x1x32x32xf32, #tpu.memory_space<vmem>>) attributes {dimension_semantics = [#tpu.dimension_semantics<parallel>, #tpu.dimension_semantics<parallel>], iteration_bounds = array<i64: 2, 4>, scalar_prefetch = 0 : i64, scratch_operands = 0 : i64, tpu.core_type = #tpu.core_type<tc>, window_params = [{transform_indices = @transform_0, window_bounds = array<i64: 1, 1, 32, 32>}, {transform_indices = @transform_1, window_bounds = array<i64: 1, 1, 32, 32>}, {transform_indices = @transform_2, window_bounds = array<i64: 1, 1, 32, 32>}, {transform_indices = @transform_3, window_bounds = array<i64: 1, 1, 32, 32>}]} {
    %c0 = arith.constant 0 : index
    %c0_0 = arith.constant 0 : index
    %c0_1 = arith.constant 0 : index
    %c0_2 = arith.constant 0 : index
    %0 = vector.load %arg2[%c0, %c0_0, %c0_1, %c0_2] : memref<1x1x32x32xbf16, #tpu.memory_space<vmem>>, vector<1x1x32x32xbf16>
    %1 = vector.shape_cast %0 : vector<1x1x32x32xbf16> to vector<32x32xbf16>
    %c0_3 = arith.constant 0 : index
    %c0_4 = arith.constant 0 : index
    %c0_5 = arith.constant 0 : index
    %c0_6 = arith.constant 0 : index
    %2 = vector.load %arg3[%c0_3, %c0_4, %c0_5, %c0_6] : memref<1x1x32x32xbf16, #tpu.memory_space<vmem>>, vector<1x1x32x32xbf16>
    %3 = vector.shape_cast %2 : vector<1x1x32x32xbf16> to vector<32x32xbf16>
    %c0_7 = arith.constant 0 : index
    %c0_8 = arith.constant 0 : index
    %c0_9 = arith.constant 0 : index
    %c0_10 = arith.constant 0 : index
    %4 = vector.load %arg4[%c0_7, %c0_8, %c0_9, %c0_10] : memref<1x1x32x32xbf16, #tpu.memory_space<vmem>>, vector<1x1x32x32xbf16>
    %5 = vector.shape_cast %4 : vector<1x1x32x32xbf16> to vector<32x32xbf16>
    %cst = arith.constant dense<0.000000e+00> : vector<32x32xf32>
    %6 = tpu.matmul %1, %3, %cst {dimension_numbers = #tpu.dot_dimension_numbers<[1], [1], [0], [0], [0, 0, 1, 0], [], []>} : vector<32x32xbf16>, vector<32x32xbf16>, vector<32x32xf32> -> vector<32x32xf32>
    %cst_11 = arith.constant 0.176776692 : f32
    %7 = vector.broadcast %cst_11 : f32 to vector<32x32xf32>
    %8 = arith.mulf %6, %7 : vector<32x32xf32>
    %9 = tpu.iota {dimensions = array<i32: 0>} : vector<32x32xi32>
    %10 = tpu.iota {dimensions = array<i32: 1>} : vector<32x32xi32>
    %11 = arith.cmpi sge, %9, %10 : vector<32x32xi32>
    %cst_12 = arith.constant -1.000000e+30 : f32
    %12 = vector.broadcast %cst_12 : f32 to vector<32x32xf32>
    %13 = arith.select %11, %8, %12 : vector<32x32xi1>, vector<32x32xf32>
    %cst_13 = arith.constant dense<0xFF800000> : vector<32xf32>
    %14 = vector.multi_reduction <maximumf>, %13, %cst_13 [1] : vector<32x32xf32> to vector<32xf32>
    %15 = vector.shape_cast %14 : vector<32xf32> to vector<32x1xf32>
    %16 = vector.broadcast %15 : vector<32x1xf32> to vector<32x32xf32>
    %17 = arith.subf %13, %16 : vector<32x32xf32>
    %18 = math.exp %17 : vector<32x32xf32>
    %cst_14 = arith.constant dense<0.000000e+00> : vector<32xf32>
    %19 = vector.multi_reduction <add>, %18, %cst_14 [1] : vector<32x32xf32> to vector<32xf32>
    %20 = vector.shape_cast %19 : vector<32xf32> to vector<32x1xf32>
    %21 = tpu.reciprocal %20 {approx = true} : vector<32x1xf32> -> vector<32x1xf32>
    %22 = vector.broadcast %21 : vector<32x1xf32> to vector<32x32xf32>
    %23 = arith.mulf %18, %22 : vector<32x32xf32>
    %24 = arith.truncf %23 : vector<32x32xf32> to vector<32x32xbf16>
    %cst_15 = arith.constant dense<0.000000e+00> : vector<32x32xf32>
    %25 = tpu.matmul %24, %5, %cst_15 {dimension_numbers = #tpu.dot_dimension_numbers<[1], [0], [0], [1], [0, 0, 1, 1], [], []>} : vector<32x32xbf16>, vector<32x32xbf16>, vector<32x32xf32> -> vector<32x32xf32>
    %c0_16 = arith.constant 0 : index
    %c0_17 = arith.constant 0 : index
    %c0_18 = arith.constant 0 : index
    %c0_19 = arith.constant 0 : index
    %26 = vector.load %arg5[%c0_16, %c0_17, %c0_18, %c0_19] : memref<1x1x32x32xf32, #tpu.memory_space<vmem>>, vector<1x1x32x32xf32>
    %27 = vector.shape_cast %26 : vector<1x1x32x32xf32> to vector<32x32xf32>
    %28 = vector.shape_cast %25 : vector<32x32xf32> to vector<1x1x32x32xf32>
    tpu.vector_store %arg5[%c0_16, %c0_17, %c0_18, %c0_19], %28 {strides = array<i32>} : memref<1x1x32x32xf32, #tpu.memory_space<vmem>>, vector<1x1x32x32xf32>,
    return
  }
  func.func @transform_0(%arg0: i32, %arg1: i32) -> (i32, i32, i32, i32) {
    %c0_i32 = arith.constant 0 : i32
    %c0_i32_0 = arith.constant 0 : i32
    %c0_i32_1 = arith.constant 0 : i32
    return %arg0, %arg1, %c0_i32, %c0_i32_0 : i32, i32, i32, i32
  }
  func.func @transform_1(%arg0: i32, %arg1: i32) -> (i32, i32, i32, i32) {
    %c0_i32 = arith.constant 0 : i32
    %c0_i32_0 = arith.constant 0 : i32
    %c0_i32_1 = arith.constant 0 : i32
    return %arg0, %arg1, %c0_i32, %c0_i32_0 : i32, i32, i32, i32
  }
  func.func @transform_2(%arg0: i32, %arg1: i32) -> (i32, i32, i32, i32) {
    %c0_i32 = arith.constant 0 : i32
    %c0_i32_0 = arith.constant 0 : i32
    %c0_i32_1 = arith.constant 0 : i32
    return %arg0, %arg1, %c0_i32, %c0_i32_0 : i32, i32, i32, i32
  }
  func.func @transform_3(%arg0: i32, %arg1: i32) -> (i32, i32, i32, i32) {
    %c0_i32 = arith.constant 0 : i32
    %c0_i32_0 = arith.constant 0 : i32
    %c0_i32_1 = arith.constant 0 : i32
    return %arg0, %arg1, %c0_i32, %c0_i32_0 : i32, i32, i32, i32
  }
}

module attributes {stable_mosaic.version = 11 : i64} {
  func.func @proj_mlp_kernel(%arg0: i32, %arg1: memref<1x32x128xf32, #tpu.memory_space<vmem>>, %arg2: memref<1x32x128xf32, #tpu.memory_space<vmem>>, %arg3: memref<128x128xbf16, #tpu.memory_space<vmem>>, %arg4: memref<1x128xf32, #tpu.memory_space<vmem>>, %arg5: memref<1x128xf32, #tpu.memory_space<vmem>>, %arg6: memref<1x128xf32, #tpu.memory_space<vmem>>, %arg7: memref<128x512xbf16, #tpu.memory_space<vmem>>, %arg8: memref<1x512xf32, #tpu.memory_space<vmem>>, %arg9: memref<512x128xbf16, #tpu.memory_space<vmem>>, %arg10: memref<1x128xf32, #tpu.memory_space<vmem>>, %arg11: memref<1x32x128xf32, #tpu.memory_space<vmem>>) attributes {dimension_semantics = [#tpu.dimension_semantics<parallel>], iteration_bounds = array<i64: 2>, scalar_prefetch = 0 : i64, scratch_operands = 0 : i64, tpu.core_type = #tpu.core_type<tc>, window_params = [{transform_indices = @transform_0, window_bounds = array<i64: 1, 32, 128>}, {transform_indices = @transform_1, window_bounds = array<i64: 1, 32, 128>}, {pipeline_mode = #tpu.pipeline_mode<synchronous>, transform_indices = @transform_2, window_bounds = array<i64: 128, 128>}, {pipeline_mode = #tpu.pipeline_mode<synchronous>, transform_indices = @transform_3, window_bounds = array<i64: 1, 128>}, {pipeline_mode = #tpu.pipeline_mode<synchronous>, transform_indices = @transform_4, window_bounds = array<i64: 1, 128>}, {pipeline_mode = #tpu.pipeline_mode<synchronous>, transform_indices = @transform_5, window_bounds = array<i64: 1, 128>}, {pipeline_mode = #tpu.pipeline_mode<synchronous>, transform_indices = @transform_6, window_bounds = array<i64: 128, 512>}, {pipeline_mode = #tpu.pipeline_mode<synchronous>, transform_indices = @transform_7, window_bounds = array<i64: 1, 512>}, {pipeline_mode = #tpu.pipeline_mode<synchronous>, transform_indices = @transform_8, window_bounds = array<i64: 512, 128>}, {pipeline_mode = #tpu.pipeline_mode<synchronous>, transform_indices = @transform_9, window_bounds = array<i64: 1, 128>}, {transform_indices = @transform_10, window_bounds = array<i64: 1, 32, 128>}]} {
    %c0 = arith.constant 0 : index
    %c0_0 = arith.constant 0 : index
    %c0_1 = arith.constant 0 : index
    %0 = vector.load %arg1[%c0, %c0_0, %c0_1] : memref<1x32x128xf32, #tpu.memory_space<vmem>>, vector<1x32x128xf32>
    %1 = vector.shape_cast %0 : vector<1x32x128xf32> to vector<32x128xf32>
    %c0_2 = arith.constant 0 : index
    %c0_3 = arith.constant 0 : index
    %c0_4 = arith.constant 0 : index
    %2 = vector.load %arg2[%c0_2, %c0_3, %c0_4] : memref<1x32x128xf32, #tpu.memory_space<vmem>>, vector<1x32x128xf32>
    %3 = vector.shape_cast %2 : vector<1x32x128xf32> to vector<32x128xf32>
    %4 = arith.truncf %3 : vector<32x128xf32> to vector<32x128xbf16>
    %c0_5 = arith.constant 0 : index
    %c0_6 = arith.constant 0 : index
    %5 = vector.load %arg3[%c0_5, %c0_6] : memref<128x128xbf16, #tpu.memory_space<vmem>>, vector<128x128xbf16>
    %cst = arith.constant dense<0.000000e+00> : vector<32x128xf32>
    %6 = tpu.matmul %4, %5, %cst {dimension_numbers = #tpu.dot_dimension_numbers<[1], [0], [0], [1], [0, 0, 1, 1], [], []>} : vector<32x128xbf16>, vector<128x128xbf16>, vector<32x128xf32> -> vector<32x128xf32>
    %c0_7 = arith.constant 0 : index
    %c0_8 = arith.constant 0 : index
    %7 = vector.load %arg4[%c0_7, %c0_8] : memref<1x128xf32, #tpu.memory_space<vmem>>, vector<1x128xf32>
    %8 = vector.broadcast %7 : vector<1x128xf32> to vector<32x128xf32>
    %9 = arith.addf %6, %8 : vector<32x128xf32>
    %10 = arith.addf %1, %9 : vector<32x128xf32>
    %c0_9 = arith.constant 0 : index
    %c0_10 = arith.constant 0 : index
    %11 = vector.load %arg5[%c0_9, %c0_10] : memref<1x128xf32, #tpu.memory_space<vmem>>, vector<1x128xf32>
    %c0_11 = arith.constant 0 : index
    %c0_12 = arith.constant 0 : index
    %12 = vector.load %arg6[%c0_11, %c0_12] : memref<1x128xf32, #tpu.memory_space<vmem>>, vector<1x128xf32>
    %cst_13 = arith.constant dense<0.000000e+00> : vector<32xf32>
    %13 = vector.multi_reduction <add>, %10, %cst_13 [1] : vector<32x128xf32> to vector<32xf32>
    %14 = vector.shape_cast %13 : vector<32xf32> to vector<32x1xf32>
    %cst_14 = arith.constant 1.280000e+02 : f32
    %15 = vector.broadcast %cst_14 : f32 to vector<32x1xf32>
    %16 = arith.divf %14, %15 : vector<32x1xf32>
    %17 = vector.broadcast %16 : vector<32x1xf32> to vector<32x128xf32>
    %18 = arith.subf %10, %17 : vector<32x128xf32>
    %19 = arith.mulf %18, %18 : vector<32x128xf32>
    %cst_15 = arith.constant dense<0.000000e+00> : vector<32xf32>
    %20 = vector.multi_reduction <add>, %19, %cst_15 [1] : vector<32x128xf32> to vector<32xf32>
    %21 = vector.shape_cast %20 : vector<32xf32> to vector<32x1xf32>
    %cst_16 = arith.constant 1.280000e+02 : f32
    %22 = vector.broadcast %cst_16 : f32 to vector<32x1xf32>
    %23 = arith.divf %21, %22 : vector<32x1xf32>
    %cst_17 = arith.constant 9.99999974E-6 : f32
    %24 = vector.broadcast %cst_17 : f32 to vector<32x1xf32>
    %25 = arith.addf %23, %24 : vector<32x1xf32>
    %26 = math.rsqrt %25 : vector<32x1xf32>
    %27 = vector.broadcast %26 : vector<32x1xf32> to vector<32x128xf32>
    %28 = arith.mulf %18, %27 : vector<32x128xf32>
    %29 = vector.broadcast %11 : vector<1x128xf32> to vector<32x128xf32>
    %30 = arith.mulf %28, %29 : vector<32x128xf32>
    %31 = vector.broadcast %12 : vector<1x128xf32> to vector<32x128xf32>
    %32 = arith.addf %30, %31 : vector<32x128xf32>
    %33 = arith.truncf %32 : vector<32x128xf32> to vector<32x128xbf16>
    %c0_18 = arith.constant 0 : index
    %c0_19 = arith.constant 0 : index
    %34 = vector.load %arg7[%c0_18, %c0_19] : memref<128x512xbf16, #tpu.memory_space<vmem>>, vector<128x512xbf16>
    %cst_20 = arith.constant dense<0.000000e+00> : vector<32x512xf32>
    %35 = tpu.matmul %33, %34, %cst_20 {dimension_numbers = #tpu.dot_dimension_numbers<[1], [0], [0], [1], [0, 0, 1, 1], [], []>} : vector<32x128xbf16>, vector<128x512xbf16>, vector<32x512xf32> -> vector<32x512xf32>
    %c0_21 = arith.constant 0 : index
    %c0_22 = arith.constant 0 : index
    %36 = vector.load %arg8[%c0_21, %c0_22] : memref<1x512xf32, #tpu.memory_space<vmem>>, vector<1x512xf32>
    %37 = vector.broadcast %36 : vector<1x512xf32> to vector<32x512xf32>
    %38 = arith.addf %35, %37 : vector<32x512xf32>
    %cst_23 = arith.constant 5.000000e-01 : f32
    %39 = vector.broadcast %cst_23 : f32 to vector<32x512xf32>
    %40 = arith.mulf %39, %38 : vector<32x512xf32>
    %cst_24 = arith.constant 4.471500e-02 : f32
    %41 = vector.broadcast %cst_24 : f32 to vector<32x512xf32>
    %42 = arith.mulf %41, %38 : vector<32x512xf32>
    %43 = arith.mulf %42, %38 : vector<32x512xf32>
    %44 = arith.mulf %43, %38 : vector<32x512xf32>
    %45 = arith.addf %38, %44 : vector<32x512xf32>
    %cst_25 = arith.constant 0.797884583 : f32
    %46 = vector.broadcast %cst_25 : f32 to vector<32x512xf32>
    %47 = arith.mulf %46, %45 : vector<32x512xf32>
    %48 = math.tanh %47 : vector<32x512xf32>
    %cst_26 = arith.constant 1.000000e+00 : f32
    %49 = vector.broadcast %cst_26 : f32 to vector<32x512xf32>
    %50 = arith.addf %49, %48 : vector<32x512xf32>
    %51 = arith.mulf %40, %50 : vector<32x512xf32>
    %52 = arith.truncf %51 : vector<32x512xf32> to vector<32x512xbf16>
    %c0_27 = arith.constant 0 : index
    %c0_28 = arith.constant 0 : index
    %53 = vector.load %arg9[%c0_27, %c0_28] : memref<512x128xbf16, #tpu.memory_space<vmem>>, vector<512x128xbf16>
    %cst_29 = arith.constant dense<0.000000e+00> : vector<32x128xf32>
    %54 = tpu.matmul %52, %53, %cst_29 {dimension_numbers = #tpu.dot_dimension_numbers<[1], [0], [0], [1], [0, 0, 1, 1], [], []>} : vector<32x512xbf16>, vector<512x128xbf16>, vector<32x128xf32> -> vector<32x128xf32>
    %55 = arith.addf %10, %54 : vector<32x128xf32>
    %c0_30 = arith.constant 0 : index
    %c0_31 = arith.constant 0 : index
    %56 = vector.load %arg10[%c0_30, %c0_31] : memref<1x128xf32, #tpu.memory_space<vmem>>, vector<1x128xf32>
    %57 = vector.broadcast %56 : vector<1x128xf32> to vector<32x128xf32>
    %58 = arith.addf %55, %57 : vector<32x128xf32>
    %c0_32 = arith.constant 0 : index
    %c0_33 = arith.constant 0 : index
    %c0_34 = arith.constant 0 : index
    %59 = vector.load %arg11[%c0_32, %c0_33, %c0_34] : memref<1x32x128xf32, #tpu.memory_space<vmem>>, vector<1x32x128xf32>
    %60 = vector.shape_cast %59 : vector<1x32x128xf32> to vector<32x128xf32>
    %61 = vector.shape_cast %58 : vector<32x128xf32> to vector<1x32x128xf32>
    tpu.vector_store %arg11[%c0_32, %c0_33, %c0_34], %61 {strides = array<i32>} : memref<1x32x128xf32, #tpu.memory_space<vmem>>, vector<1x32x128xf32>,
    return
  }
  func.func @transform_0(%arg0: i32) -> (i32, i32, i32) {
    %c0_i32 = arith.constant 0 : i32
    %c0_i32_0 = arith.constant 0 : i32
    %c0_i32_1 = arith.constant 0 : i32
    return %arg0, %c0_i32, %c0_i32_0 : i32, i32, i32
  }
  func.func @transform_1(%arg0: i32) -> (i32, i32, i32) {
    %c0_i32 = arith.constant 0 : i32
    %c0_i32_0 = arith.constant 0 : i32
    %c0_i32_1 = arith.constant 0 : i32
    return %arg0, %c0_i32, %c0_i32_0 : i32, i32, i32
  }
  func.func @transform_2(%arg0: i32) -> (i32, i32) {
    %c0_i32 = arith.constant 0 : i32
    %c0_i32_0 = arith.constant 0 : i32
    %c0_i32_1 = arith.constant 0 : i32
    return %c0_i32, %c0_i32_0 : i32, i32
  }
  func.func @transform_3(%arg0: i32) -> (i32, i32) {
    %c0_i32 = arith.constant 0 : i32
    %c0_i32_0 = arith.constant 0 : i32
    %c0_i32_1 = arith.constant 0 : i32
    return %c0_i32, %c0_i32_0 : i32, i32
  }
  func.func @transform_4(%arg0: i32) -> (i32, i32) {
    %c0_i32 = arith.constant 0 : i32
    %c0_i32_0 = arith.constant 0 : i32
    %c0_i32_1 = arith.constant 0 : i32
    return %c0_i32, %c0_i32_0 : i32, i32
  }
  func.func @transform_5(%arg0: i32) -> (i32, i32) {
    %c0_i32 = arith.constant 0 : i32
    %c0_i32_0 = arith.constant 0 : i32
    %c0_i32_1 = arith.constant 0 : i32
    return %c0_i32, %c0_i32_0 : i32, i32
  }
  func.func @transform_6(%arg0: i32) -> (i32, i32) {
    %c0_i32 = arith.constant 0 : i32
    %c0_i32_0 = arith.constant 0 : i32
    %c0_i32_1 = arith.constant 0 : i32
    return %c0_i32, %c0_i32_0 : i32, i32
  }
  func.func @transform_7(%arg0: i32) -> (i32, i32) {
    %c0_i32 = arith.constant 0 : i32
    %c0_i32_0 = arith.constant 0 : i32
    %c0_i32_1 = arith.constant 0 : i32
    return %c0_i32, %c0_i32_0 : i32, i32
  }
  func.func @transform_8(%arg0: i32) -> (i32, i32) {
    %c0_i32 = arith.constant 0 : i32
    %c0_i32_0 = arith.constant 0 : i32
    %c0_i32_1 = arith.constant 0 : i32
    return %c0_i32, %c0_i32_0 : i32, i32
  }
  func.func @transform_9(%arg0: i32) -> (i32, i32) {
    %c0_i32 = arith.constant 0 : i32
    %c0_i32_0 = arith.constant 0 : i32
    %c0_i32_1 = arith.constant 0 : i32
    return %c0_i32, %c0_i32_0 : i32, i32
  }
  func.func @transform_10(%arg0: i32) -> (i32, i32, i32) {
    %c0_i32 = arith.constant 0 : i32
    %c0_i32_0 = arith.constant 0 : i32
    %c0_i32_1 = arith.constant 0 : i32
    return %arg0, %c0_i32, %c0_i32_0 : i32, i32, i32
  }
}

module attributes {stable_mosaic.version = 11 : i64} {
  func.func @lnf_head_kernel(%arg0: i32, %arg1: memref<1x32x128xf32, #tpu.memory_space<vmem>>, %arg2: memref<1x128xf32, #tpu.memory_space<vmem>>, %arg3: memref<1x128xf32, #tpu.memory_space<vmem>>, %arg4: memref<256x128xbf16, #tpu.memory_space<vmem>>, %arg5: memref<1x32x256xf32, #tpu.memory_space<vmem>>) attributes {dimension_semantics = [#tpu.dimension_semantics<parallel>], iteration_bounds = array<i64: 2>, scalar_prefetch = 0 : i64, scratch_operands = 0 : i64, tpu.core_type = #tpu.core_type<tc>, window_params = [{transform_indices = @transform_0, window_bounds = array<i64: 1, 32, 128>}, {pipeline_mode = #tpu.pipeline_mode<synchronous>, transform_indices = @transform_1, window_bounds = array<i64: 1, 128>}, {pipeline_mode = #tpu.pipeline_mode<synchronous>, transform_indices = @transform_2, window_bounds = array<i64: 1, 128>}, {pipeline_mode = #tpu.pipeline_mode<synchronous>, transform_indices = @transform_3, window_bounds = array<i64: 256, 128>}, {transform_indices = @transform_4, window_bounds = array<i64: 1, 32, 256>}]} {
    %c0 = arith.constant 0 : index
    %c0_0 = arith.constant 0 : index
    %c0_1 = arith.constant 0 : index
    %0 = vector.load %arg1[%c0, %c0_0, %c0_1] : memref<1x32x128xf32, #tpu.memory_space<vmem>>, vector<1x32x128xf32>
    %1 = vector.shape_cast %0 : vector<1x32x128xf32> to vector<32x128xf32>
    %c0_2 = arith.constant 0 : index
    %c0_3 = arith.constant 0 : index
    %2 = vector.load %arg2[%c0_2, %c0_3] : memref<1x128xf32, #tpu.memory_space<vmem>>, vector<1x128xf32>
    %c0_4 = arith.constant 0 : index
    %c0_5 = arith.constant 0 : index
    %3 = vector.load %arg3[%c0_4, %c0_5] : memref<1x128xf32, #tpu.memory_space<vmem>>, vector<1x128xf32>
    %cst = arith.constant dense<0.000000e+00> : vector<32xf32>
    %4 = vector.multi_reduction <add>, %1, %cst [1] : vector<32x128xf32> to vector<32xf32>
    %5 = vector.shape_cast %4 : vector<32xf32> to vector<32x1xf32>
    %cst_6 = arith.constant 1.280000e+02 : f32
    %6 = vector.broadcast %cst_6 : f32 to vector<32x1xf32>
    %7 = arith.divf %5, %6 : vector<32x1xf32>
    %8 = vector.broadcast %7 : vector<32x1xf32> to vector<32x128xf32>
    %9 = arith.subf %1, %8 : vector<32x128xf32>
    %10 = arith.mulf %9, %9 : vector<32x128xf32>
    %cst_7 = arith.constant dense<0.000000e+00> : vector<32xf32>
    %11 = vector.multi_reduction <add>, %10, %cst_7 [1] : vector<32x128xf32> to vector<32xf32>
    %12 = vector.shape_cast %11 : vector<32xf32> to vector<32x1xf32>
    %cst_8 = arith.constant 1.280000e+02 : f32
    %13 = vector.broadcast %cst_8 : f32 to vector<32x1xf32>
    %14 = arith.divf %12, %13 : vector<32x1xf32>
    %cst_9 = arith.constant 9.99999974E-6 : f32
    %15 = vector.broadcast %cst_9 : f32 to vector<32x1xf32>
    %16 = arith.addf %14, %15 : vector<32x1xf32>
    %17 = math.rsqrt %16 : vector<32x1xf32>
    %18 = vector.broadcast %17 : vector<32x1xf32> to vector<32x128xf32>
    %19 = arith.mulf %9, %18 : vector<32x128xf32>
    %20 = vector.broadcast %2 : vector<1x128xf32> to vector<32x128xf32>
    %21 = arith.mulf %19, %20 : vector<32x128xf32>
    %22 = vector.broadcast %3 : vector<1x128xf32> to vector<32x128xf32>
    %23 = arith.addf %21, %22 : vector<32x128xf32>
    %24 = arith.truncf %23 : vector<32x128xf32> to vector<32x128xbf16>
    %c0_10 = arith.constant 0 : index
    %c0_11 = arith.constant 0 : index
    %25 = vector.load %arg4[%c0_10, %c0_11] : memref<256x128xbf16, #tpu.memory_space<vmem>>, vector<256x128xbf16>
    %cst_12 = arith.constant dense<0.000000e+00> : vector<32x256xf32>
    %26 = tpu.matmul %24, %25, %cst_12 {dimension_numbers = #tpu.dot_dimension_numbers<[1], [1], [0], [0], [0, 0, 1, 0], [], []>} : vector<32x128xbf16>, vector<256x128xbf16>, vector<32x256xf32> -> vector<32x256xf32>
    %c0_13 = arith.constant 0 : index
    %c0_14 = arith.constant 0 : index
    %c0_15 = arith.constant 0 : index
    %27 = vector.load %arg5[%c0_13, %c0_14, %c0_15] : memref<1x32x256xf32, #tpu.memory_space<vmem>>, vector<1x32x256xf32>
    %28 = vector.shape_cast %27 : vector<1x32x256xf32> to vector<32x256xf32>
    %29 = vector.shape_cast %26 : vector<32x256xf32> to vector<1x32x256xf32>
    tpu.vector_store %arg5[%c0_13, %c0_14, %c0_15], %29 {strides = array<i32>} : memref<1x32x256xf32, #tpu.memory_space<vmem>>, vector<1x32x256xf32>,
    return
  }
  func.func @transform_0(%arg0: i32) -> (i32, i32, i32) {
    %c0_i32 = arith.constant 0 : i32
    %c0_i32_0 = arith.constant 0 : i32
    %c0_i32_1 = arith.constant 0 : i32
    return %arg0, %c0_i32, %c0_i32_0 : i32, i32, i32
  }
  func.func @transform_1(%arg0: i32) -> (i32, i32) {
    %c0_i32 = arith.constant 0 : i32
    %c0_i32_0 = arith.constant 0 : i32
    %c0_i32_1 = arith.constant 0 : i32
    return %c0_i32, %c0_i32_0 : i32, i32
  }
  func.func @transform_2(%arg0: i32) -> (i32, i32) {
    %c0_i32 = arith.constant 0 : i32
    %c0_i32_0 = arith.constant 0 : i32
    %c0_i32_1 = arith.constant 0 : i32
    return %c0_i32, %c0_i32_0 : i32, i32
  }
  func.func @transform_3(%arg0: i32) -> (i32, i32) {
    %c0_i32 = arith.constant 0 : i32
    %c0_i32_0 = arith.constant 0 : i32
    %c0_i32_1 = arith.constant 0 : i32
    return %c0_i32, %c0_i32_0 : i32, i32
  }
  func.func @transform_4(%arg0: i32) -> (i32, i32, i32) {
    %c0_i32 = arith.constant 0 : i32
    %c0_i32_0 = arith.constant 0 : i32
    %c0_i32_1 = arith.constant 0 : i32
    return %arg0, %c0_i32, %c0_i32_0 : i32, i32, i32
  }
}

</mosaic_0001>

<bundles_post_ra>
// kernel: gpt_forward.8
= control target key start
LH: loop header
LB: loop body
LE: loop exit
PB: predicated region body
PF: predicated region fallthrough
CT: control target
= control target key end

     0   :  { %s820_s12 = smov 0   ;;  %s822_s13 = smov 0   ;;  %s906_s0 = inlined_call_operand.vmem [shape: bf16[2,4,32,32], index: 0, kind: input, shape index: {}]   ;;  %s907_s1 = inlined_call_operand.vmem [shape: bf16[2,4,32,32], index: 1, kind: input, shape index: {}]   ;;  %s908_s2 = inlined_call_operand.vmem [shape: bf16[2,4,32,32], index: 2, kind: input, shape index: {}]   ;;  %s909_s3 = inlined_call_operand.vmem [shape: f32[2,4,32,32], index: 3, kind: output, shape index: {}]  }
   0x1   :  { %s824_s14 = smov 0   ;;  %s826_s15 = smov 0  }
   0x2   :  { %s828_s16 = smov 0  }
   0x3 LB: > { %s22_s17 = sadd.s32 1, %s790_s14  ;;  %s25_s18 = sadd.s32 1, %s794_s15  ;;  %s798_s16 = sphi %s828_s16, %s13_s16   ;;  %s794_s15 = sphi %s826_s15, %s913_s15   ;;  %s790_s14 = sphi %s824_s14, %s912_s14   ;;  %s786_s13 = sphi %s822_s13, %s911_s13   ;;  %s782_s12 = sphi %s820_s12, %s910_s12  }
   0x4   : > { %p23_p0 = scmp.ge.s32.totalorder %s22_s17, 4  ;;  %p647_p1 = scmp.ge.s32.totalorder %s798_s16, 1 }
   0x5   : > { %p189_p2 = scmp.lt.s32.totalorder %s798_s16, 9 }
   0x6   : > { %s915_s17 = smov (%p23_p0, %s22_s17), 0  ;;  %s917_s18 = smov (!%p23_p0, %s25_s18), %s794_s15 }
   0x7   : > { %p190_p3 = pnand %p647_p1, %p189_p2  ;;  %p27_p4 = scmp.ge.s32.totalorder %s917_s18, 2 }
   0x8   : > { %p239_p5 = scmp.lt.s32.totalorder (!%p190_p3), %s786_s13, 1  ;;  %p241_p6 = scmp.lt.s32.totalorder (!%p190_p3), %s782_s12, 3  ;;  %vm308_vm0 = vcmask (!%p190_p3), 261120   ;;  %v374_v6 = vlaneseq (!%p190_p3) }
   0x9   : > { %s919_s18 = smov (%p27_p4, %s917_s18), 0  ;;  %193 = sbr.rel (%p190_p3) target bundleno = 794 (0x31a), region = 32 }
   0xa   : > { %v375_v7 = vshrl.u32 (!%p190_p3), %v374_v6, 7  ;;  %v380_v9 = vand.u32 (!%p190_p3), 127, %v374_v6 }
   0xc   : > { %v377_v8 = vadd.s32 (!%p190_p3), 16, %v375_v7  ;;  %v378_v10 = vadd.s32 (!%p190_p3), 24, %v375_v7  ;;  %v376_v11 = vadd.s32 (!%p190_p3), 8, %v375_v7  ;;  %vm381_vm2 = vcmp.ge.s32.totalorder (!%p190_p3), %v375_v7, %v380_v9 }
   0xe   : > { %vm383_vm1 = vcmp.ge.s32.totalorder (!%p190_p3), %v377_v8, %v380_v9  ;;  %vm384_vm3 = vcmp.ge.s32.totalorder (!%p190_p3), %v378_v10, %v380_v9  ;;  %vm382_vm4 = vcmp.ge.s32.totalorder (!%p190_p3), %v376_v11, %v380_v9 }
  0x10   : > { %s921_s13 = smov (!%p239_p5, %s786_s13), 1  ;;  %s923_s12 = smov (!%p241_p6, %s782_s12), 3 }
  0x11   : > { %s649_s19 = sshll.u32 %s921_s13, 4  ;;  %s648_s20 = sshll.u32 %s923_s12, 2 }
  0x12   : > { %s850_s21 = sadd.s32 %s649_s19, %s648_s20 }
  0x13   : > { %s853_s22 = sshll.u32 %s850_s21, 2  ;;  %s659_s5 = sshll.u32 %s850_s21, 3 }
  0x14   : > { %s256_s25 = scalar_lea.vmem %s907_s1, %s853_s22  ;;  %s247_s28 = scalar_lea.vmem %s906_s0, %s853_s22 }
  0x15   : > { %v738_v0 = vld [vmem:[%s256_s25] sm:$0xff]   ;;  %v739_v1 = vld [vmem:[%s256_s25 + $0x8] sm:$0xff]   ;;  %s265_s4 = scalar_lea.vmem %s908_s2, %s853_s22  ;;  %s274_s8 = scalar_lea.vmem %s909_s3, %s659_s5 }
  0x16   : > { %696 = vmatprep.subr.msk.bf16.mxu0 %vm308_vm0, %v738_v0  ;;  %v316_v2 = vsel %vm308_vm0, %v738_v0, 0  ;;  %v740_v3 = vld [vmem:[%s247_s28] sm:$0xff]   ;;  %v319_v4 = vsel %vm308_vm0, %v739_v1, 0  ;;  %v741_v5 = vld [vmem:[%s247_s28 + $0x8] sm:$0xff]  }
  0x17   : > { %681 = vmatpush3.bf16.xpose.msra.mxu0 %v316_v2  ;;  %684 = vmatprep.mubr.msk.bf16.mxu0 %vm308_vm0, %v740_v3  ;;  %v742_v48 = vld [vmem:[%s265_s4] sm:$0xff]   ;;  %v743_v49 = vld [vmem:[%s265_s4 + $0x8] sm:$0xff]  }
  0x18   : > { %697 = vmatprep.subr.msk.bf16.mxu0 %vm308_vm0, %v739_v1  ;;  %688 = vmatprep.subr.bf16.mxu1 %v742_v48 }
  0x19   : > { %689 = vmatpush3.bf16.msra.mxu1 %v742_v48 }
  0x1a   : > { %690 = vmatprep.subr.bf16.mxu1 %v743_v49 }
  0x1d   : > { %691 = vmatpush3.bf16.msra.mxu1 %v743_v49 }
  0x1f   : > { %683 = vmatpush3.bf16.xpose.msra.mxu0 %v319_v4 }
  0x26   : > { %685 = vmatmul.mubr.msk.bf16.vlgmr.msra.gmra.mrb[0].mxu0 %vm308_vm0, %v741_v5 }
  0xf9   : > { %v686_v12 = vpop.f32.mrb[0].mxu0 }
  0xfa   : > { %v372_v13 = vmul.f32 0.17677669, %v686_v12  ;;  %v355_v14 = vpop.f32.mrb[1].mxu0 }
  0xfb   : > { %v370_v15 = vmul.f32 0.17677669, %v355_v14  ;;  %v687_v16 = vpop.f32.mrb[2].mxu0 }
  0xfc   : > { %v373_v17 = vmul.f32 0.17677669, %v687_v16  ;;  %v358_v18 = vpop.f32.mrb[3].mxu0  ;;  %v387_v19 = vsel %vm383_vm1, %v372_v13, -1e+30 }
  0xfd   : > { %v371_v20 = vmul.f32 0.17677669, %v358_v18  ;;  %v395_v21 = vsel %vm308_vm0, %v387_v19, -inf  ;;  %v385_v22 = vsel %vm381_vm2, %v370_v15, -1e+30 }
  0xfe   : > { %396 = vmax.xlane.f32.xlu1 %v395_v21  ;;  %v389_v23 = vsel %vm308_vm0, %v385_v22, -inf  ;;  %v388_v24 = vsel %vm384_vm3, %v373_v17, -1e+30 }
  0xff   : > { %390 = vmax.xlane.f32.xlu0 %v389_v23  ;;  %v386_v25 = vsel %vm382_vm4, %v371_v20, -1e+30  ;;  %v398_v26 = vsel %vm308_vm0, %v388_v24, -inf }
 0x100   : > { %v392_v27 = vsel %vm308_vm0, %v386_v25, -inf }
 0x102   : > { %399 = vmax.xlane.f32.xlu1 %v398_v26 }
 0x103   : > { %393 = vmax.xlane.f32.xlu0 %v392_v27 }
 0x18b   : > { %v397_v28 = vpop.xlane.xlu1 %396 }
 0x18c   : > { %v403_v29 = vsub.f32 %v387_v19, %v397_v28  ;;  %v391_v30 = vpop.xlane.xlu0 %390 }
 0x18d   : > { %v401_v31 = vsub.f32 %v385_v22, %v391_v30 }
 0x18e   : > { %v409_v32 = vmul.f32 1.442695, %v403_v29 }
 0x18f   : > { %v405_v33 = vmul.f32 1.442695, %v401_v31  ;;  %v400_v34 = vpop.xlane.xlu1 %399 }
 0x190   : > { %v404_v35 = vsub.f32 %v388_v24, %v400_v34  ;;  %v394_v36 = vpop.xlane.xlu0 %393 }
 0x191   : > { %744 = vpow2.f32 %v405_v33  ;;  %v402_v37 = vsub.f32 %v386_v25, %v394_v36 }
 0x192   : > { %746 = vpow2.f32 %v409_v32  ;;  %v411_v38 = vmul.f32 1.442695, %v404_v35 }
 0x193   : > { %v407_v39 = vmul.f32 1.442695, %v402_v37 }
 0x195   : > { %748 = vpow2.f32 %v407_v39 }
 0x196   : > { %750 = vpow2.f32 %v411_v38 }
 0x19b   : > { %v745_v40 = vpop.eup %744 }
 0x19c   : > { %v413_v41 = vsel %vm308_vm0, %v745_v40, 0.0  ;;  %v747_v42 = vpop.eup %746 }
 0x19d   : > { %414 = vadd.xlane.f32.xlu0 %v413_v41  ;;  %v419_v44 = vsel %vm308_vm0, %v747_v42, 0.0 }
 0x19f   : > { %v749_v43 = vpop.eup %748 }
 0x1a0   : > { %v416_v45 = vsel %vm308_vm0, %v749_v43, 0.0  ;;  %v751_v46 = vpop.eup %750 }
 0x1a1   : > { %420 = vadd.xlane.f32.xlu0 %v419_v44  ;;  %417 = vadd.xlane.f32.xlu1 %v416_v45  ;;  %v422_v47 = vsel %vm308_vm0, %v751_v46, 0.0 }
 0x1a5   : > { %423 = vadd.xlane.f32.xlu1 %v422_v47 }
 0x22a   : > { %v415_v50 = vpop.xlane.xlu0 %414 }
 0x22b   : > { %752 = vrcp.f32 %v415_v50 }
 0x22e   : > { %v418_v51 = vpop.xlane.xlu1 %417  ;;  %v421_v52 = vpop.xlane.xlu0 %420 }
 0x22f   : > { %754 = vrcp.f32 %v418_v51 }
 0x230   : > { %756 = vrcp.f32 %v421_v52 }
 0x232   : > { %v424_v53 = vpop.xlane.xlu1 %423 }
 0x233   : > { %758 = vrcp.f32 %v424_v53 }
 0x235   : > { %v753_v54 = vpop.eup %752 }
 0x236   : > { %v429_v56 = vmul.f32 %v753_v54, %v745_v40 }
 0x239   : > { %v755_v55 = vpop.eup %754 }
 0x23a   : > { %v430_v57 = vmul.f32 %v755_v55, %v749_v43  ;;  %v757_v58 = vpop.eup %756 }
 0x23b   : > { %v431_v61 = vmul.f32 %v757_v58, %v747_v42 }
 0x23c   : > { %v433_v59 = vpack.c.bf16 %v430_v57, %v429_v56 }
 0x23d   : > { %v759_v60 = vpop.eup %758 }
 0x23e   : > { %692 = vmatprep.mubr.msk.bf16.mxu1 %vm308_vm0, %v433_v59  ;;  %v432_v62 = vmul.f32 %v759_v60, %v751_v46 }
 0x240   : > { %v434_v63 = vpack.c.bf16 %v432_v62, %v431_v61 }
 0x242   : > { %693 = vmatmul.mubr.msk.bf16.vlgmr.msra.gmra.mrb[0].mxu1 %vm308_vm0, %v434_v63 }
 0x315   : > { %v694_v0 = vpop.f32.mrb[0].mxu1 }
 0x316   : > { %504 = vst.msk [vmem:[%s274_s8 + $0x10] sm:$0xff] %vm308_vm0, %v694_v0  ;;  %v487_v1 = vpop.f32.mrb[1].mxu1 }
 0x317   : > { %502 = vst.msk [vmem:[%s274_s8] sm:$0xff] %vm308_vm0, %v487_v1  ;;  %v695_v2 = vpop.f32.mrb[2].mxu1 }
 0x318   : > { %505 = vst.msk [vmem:[%s274_s8 + $0x18] sm:$0xff] %vm308_vm0, %v695_v2  ;;  %v490_v3 = vpop.f32.mrb[3].mxu1 }
 0x319   : > { %503 = vst.msk [vmem:[%s274_s8 + $0x8] sm:$0xff] %vm308_vm0, %v490_v3 }
 0x31a PF: > { %s13_s16 = sadd.s32 1, %s798_s16   ;;  %s910_s12 = smov %s790_s14 }
 0x31b   : > { %p10_p7 = scmp.ge.s32.totalorder %s13_s16, 10   ;;  %s911_s13 = smov %s794_s15 }
 0x31c   : > { %s912_s14 = smov %s915_s17  ;;  %s913_s15 = smov %s919_s18 }
 0x31d   :  { %12 = sbr.rel (!%p10_p7) target bundleno = 3 (0x3), region = 68 }

// kernel: gpt_forward.7
= control target key start
LH: loop header
LB: loop body
LE: loop exit
PB: predicated region body
PF: predicated region fallthrough
CT: control target
= control target key end

     0   :  { %s853_s18 = smov 0   ;;  %s985_s0 = inlined_call_operand.vmem [shape: f32[2,32,128], index: 0, kind: input, shape index: {}]   ;;  %s986_s1 = inlined_call_operand.vmem [shape: f32[1,128], index: 1, kind: input, shape index: {}]   ;;  %s987_s2 = inlined_call_operand.vmem [shape: f32[1,128], index: 2, kind: input, shape index: {}]   ;;  %s988_s3 = inlined_call_operand.vmem [shape: bf16[128,384], index: 3, kind: input, shape index: {}]   ;;  %s989_s4 = inlined_call_operand.vmem [shape: f32[1,384], index: 4, kind: input, shape index: {}]   ;;  %s990_s5 = inlined_call_operand.vmem [shape: bf16[2,32,384], index: 5, kind: output, shape index: {}]  }
   0x1 LB: > { %s681_s19 = sadd.s32 4294967295, %s820_s18   ;;  %p685_p0 = scmp.ge.s32.totalorder %s820_s18, 1  ;;  %s820_s18 = sphi %s853_s18, %s15_s18  }
   0x2   : > { %p187_p1 = scmp.lt.s32.totalorder %s820_s18, 3 }
   0x4   : > { %p188_p2 = pnand %p685_p0, %p187_p1 }
   0x5   : > { %p215_p3 = scmp.lt.s32.totalorder (!%p188_p2), %s681_s19, 1  ;;  %v774_v4 = vld [vmem:[%s988_s3 + $0x4] ss:$12 sps:$4 sm:$0xff] (!%p188_p2)   ;;  %v776_v5 = vld [vmem:[%s988_s3] ss:$12 sps:$4 sm:$0xff] (!%p188_p2)   ;;  %v822_v39 = vmov (!%p188_p2), 0  }
   0x6   : > { %191 = sbr.rel (%p188_p2) target bundleno = 562 (0x232), region = 40  ;;  %v777_v6 = vld [vmem:[%s988_s3 + $0x1c] ss:$12 sps:$4 sm:$0xff] (!%p188_p2)   ;;  %476 = vmatprep.subr.bf16.mxu0 (!%p188_p2), %v774_v4  ;;  %v780_v24 = vld [vmem:[%s988_s3 + $0x18] ss:$12 sps:$4 sm:$0xff] (!%p188_p2)   ;;  %508 = vmatprep.mubr.bf16.mxu0 (!%p188_p2), %v822_v39 }
   0x7   : > { %v779_v7 = vld [vmem:[%s988_s3 + $0x8] ss:$12 sps:$4 sm:$0xff] (!%p188_p2)   ;;  %477 = vmatpush1.bf16.msra.mxu0 (!%p188_p2), %v776_v5  ;;  %v783_v26 = vld [vmem:[%s988_s3 + $0x20] ss:$12 sps:$4 sm:$0xff] (!%p188_p2)   ;;  %v784_v27 = vld [vmem:[%s988_s3 + $0x30] ss:$12 sps:$4 sm:$0xff] (!%p188_p2)  }
   0x8   : > { %744 = vmatprep.subr.bf16.mxu1 (!%p188_p2), %v779_v7  ;;  %478 = vmatprep.subr.bf16.mxu0 (!%p188_p2), %v777_v6  ;;  %v781_v25 = vld [vmem:[%s988_s3 + $0x34] ss:$12 sps:$4 sm:$0xff] (!%p188_p2)   ;;  %v785_v28 = vld [vmem:[%s988_s3 + $0x4c] ss:$12 sps:$4 sm:$0xff] (!%p188_p2)   ;;  %v789_v31 = vld [vmem:[%s988_s3 + $0x64] ss:$12 sps:$4 sm:$0xff] (!%p188_p2)  }
   0x9   : > { %745 = vmatpush3.bf16.msra.mxu1 (!%p188_p2), %v779_v7  ;;  %v787_v29 = vld [vmem:[%s988_s3 + $0x38] ss:$12 sps:$4 sm:$0xff] (!%p188_p2)   ;;  %v788_v30 = vld [vmem:[%s988_s3 + $0x48] ss:$12 sps:$4 sm:$0xff] (!%p188_p2)   ;;  %v791_v32 = vld [vmem:[%s988_s3 + $0x50] ss:$12 sps:$4 sm:$0xff] (!%p188_p2)  }
   0xa   : > { %746 = vmatprep.subr.bf16.mxu1 (!%p188_p2), %v783_v26  ;;  %v792_v33 = vld [vmem:[%s988_s3 + $0x60] ss:$12 sps:$4 sm:$0xff] (!%p188_p2)   ;;  %v793_v34 = vld [vmem:[%s988_s3 + $0x7c] ss:$12 sps:$4 sm:$0xff] (!%p188_p2)   ;;  %v796_v36 = vld [vmem:[%s988_s3 + $0x78] ss:$12 sps:$4 sm:$0xff] (!%p188_p2)  }
   0xb   : > { %479 = vmatpush1.bf16.msra.mxu0 (!%p188_p2), %v780_v24  ;;  %v795_v35 = vld [vmem:[%s988_s3 + $0x68] ss:$12 sps:$4 sm:$0xff] (!%p188_p2)   ;;  %v799_v38 = vld [vmem:[%s988_s3 + $0x80] ss:$12 sps:$4 sm:$0xff] (!%p188_p2)   ;;  %v800_v40 = vld [vmem:[%s988_s3 + $0x90] ss:$12 sps:$4 sm:$0xff] (!%p188_p2)  }
   0xc   : > { %480 = vmatprep.subr.bf16.mxu0 (!%p188_p2), %v781_v25  ;;  %v797_v37 = vld [vmem:[%s988_s3 + $0x94] ss:$12 sps:$4 sm:$0xff] (!%p188_p2)   ;;  %v801_v41 = vld [vmem:[%s988_s3 + $0xac] ss:$12 sps:$4 sm:$0xff] (!%p188_p2)   ;;  %v805_v44 = vld [vmem:[%s988_s3 + $0xb0] ss:$12 sps:$4 sm:$0xff] (!%p188_p2)  }
   0xd   : > { %s992_s19 = smov (!%p215_p3, %s681_s19), 1  ;;  %747 = vmatpush3.bf16.msra.mxu1 %v783_v26  ;;  %v803_v42 = vld [vmem:[%s988_s3 + $0x98] ss:$12 sps:$4 sm:$0xff]   ;;  %v804_v43 = vld [vmem:[%s988_s3 + $0xa8] ss:$12 sps:$4 sm:$0xff]  }
   0xe   : > { %s725_s20 = sshll.u32 %s992_s19, 5  ;;  %748 = vmatprep.subr.bf16.mxu1 %v787_v29  ;;  %v689_v59 = vld [vmem:[%s986_s1] ss:$0 sm:$0xff]  ;;  %s764_s7 = smul.u32 48, %s992_s19 }
   0xf   : > { %s219_s23 = scalar_lea.vmem %s985_s0, %s725_s20  ;;  %481 = vmatpush1.bf16.msra.mxu0 %v784_v27 }
  0x10   : > { %v226_v0 = vld [vmem:[%s219_s23] sm:$0xff]  ;;  %v228_v1 = vld [vmem:[%s219_s23 + $0x10] sm:$0xff]  ;;  %v227_v2 = vld [vmem:[%s219_s23 + $0x8] sm:$0xff]  ;;  %482 = vmatprep.subr.bf16.mxu0 %v785_v28  ;;  %s972_s10 = scalar_lea.vmem %s990_s5, %s764_s7 }
  0x11   : > { %232 = vadd.xlane.f32.xlu0 %v226_v0  ;;  %236 = vadd.xlane.f32.xlu1 %v228_v1  ;;  %v229_v3 = vld [vmem:[%s219_s23 + $0x18] sm:$0xff] }
  0x12   : > { %749 = vmatpush3.bf16.msra.mxu1 %v787_v29 }
  0x13   : > { %483 = vmatpush1.bf16.msra.mxu0 %v788_v30  ;;  %750 = vmatprep.subr.bf16.mxu1 %v791_v32 }
  0x14   : > { %484 = vmatprep.subr.bf16.mxu0 %v789_v31 }
  0x15   : > { %234 = vadd.xlane.f32.xlu0 %v227_v2  ;;  %238 = vadd.xlane.f32.xlu1 %v229_v3 }
  0x16   : > { %751 = vmatpush3.bf16.msra.mxu1 %v791_v32 }
  0x17   : > { %485 = vmatpush1.bf16.msra.mxu0 %v792_v33  ;;  %752 = vmatprep.subr.bf16.mxu1 %v795_v35 }
  0x18   : > { %486 = vmatprep.subr.bf16.mxu0 %v793_v34 }
  0x1a   : > { %753 = vmatpush3.bf16.msra.mxu1 %v795_v35 }
  0x1b   : > { %487 = vmatpush1.bf16.msra.mxu0 %v796_v36  ;;  %754 = vmatprep.subr.bf16.mxu1 %v799_v38 }
  0x1c   : > { %488 = vmatprep.subr.bf16.mxu0 %v797_v37 }
  0x1e   : > { %755 = vmatpush3.bf16.msra.mxu1 %v799_v38 }
  0x1f   : > { %489 = vmatpush1.bf16.msra.mxu0 %v800_v40  ;;  %756 = vmatprep.subr.bf16.mxu1 %v803_v42 }
  0x20   : > { %490 = vmatprep.subr.bf16.mxu0 %v801_v41 }
  0x22   : > { %757 = vmatpush3.bf16.msra.mxu1 %v803_v42 }
  0x23   : > { %491 = vmatpush1.bf16.msra.mxu0 %v804_v43  ;;  %758 = vmatprep.subr.bf16.mxu1 %v805_v44 }
  0x26   : > { %759 = vmatpush3.bf16.msra.mxu1 %v805_v44 }
  0x9e   : > { %v233_v8 = vpop.xlane.xlu0 %232  ;;  %v237_v9 = vpop.xlane.xlu1 %236 }
  0x9f   : > { %v241_v10 = vmul.f32 0.0078125, %v233_v8  ;;  %v243_v11 = vmul.f32 0.0078125, %v237_v9 }
  0xa1   : > { %v879_v12 = vsub.f32 %v226_v0, %v241_v10  ;;  %v881_v13 = vsub.f32 %v228_v1, %v243_v11  ;;  %v690_v0 = vld [vmem:[%s987_s2] ss:$0 sm:$0xff] }
  0xa2   : > { %v235_v14 = vpop.xlane.xlu0 %234  ;;  %v239_v15 = vpop.xlane.xlu1 %238 }
  0xa3   : > { %v242_v16 = vmul.f32 0.0078125, %v235_v14  ;;  %v249_v17 = vmul.f32 %v879_v12, %v879_v12  ;;  %v244_v18 = vmul.f32 0.0078125, %v239_v15  ;;  %v251_v21 = vmul.f32 %v881_v13, %v881_v13 }
  0xa4   : > { %v333_v14 = vlaneseq }
  0xa5   : > { %v885_v19 = vsub.f32 %v227_v2, %v242_v16  ;;  %253 = vadd.xlane.f32.xlu0 %v249_v17  ;;  %v887_v20 = vsub.f32 %v229_v3, %v244_v18  ;;  %v331_v16 = vld [vmem:[%s989_s4] sm:$0x7] }
  0xa7   : > { %v250_v22 = vmul.f32 %v885_v19, %v885_v19  ;;  %v252_v23 = vmul.f32 %v887_v20, %v887_v20 }
  0xa9   : > { %257 = vadd.xlane.f32.xlu0 %v251_v21  ;;  %255 = vadd.xlane.f32.xlu1 %v250_v22 }
  0xad   : > { %259 = vadd.xlane.f32.xlu1 %v252_v23 }
 0x132   : > { %v254_v45 = vpop.xlane.xlu0 %253 }
 0x133   : > { %v261_v46 = vmul.f32 0.0078125, %v254_v45 }
 0x135   : > { %v265_v47 = vadd.f32 1e-05, %v261_v46 }
 0x136   : > { %v256_v48 = vpop.xlane.xlu1 %255  ;;  %v258_v49 = vpop.xlane.xlu0 %257 }
 0x137   : > { %806 = vrsqrt.f32 %v265_v47  ;;  %v262_v50 = vmul.f32 0.0078125, %v256_v48  ;;  %v263_v51 = vmul.f32 0.0078125, %v258_v49 }
 0x139   : > { %v266_v52 = vadd.f32 1e-05, %v262_v50  ;;  %v267_v53 = vadd.f32 1e-05, %v263_v51 }
 0x13a   : > { %v260_v54 = vpop.xlane.xlu1 %259 }
 0x13b   : > { %808 = vrsqrt.f32 %v266_v52  ;;  %v264_v55 = vmul.f32 0.0078125, %v260_v54 }
 0x13c   : > { %810 = vrsqrt.f32 %v267_v53 }
 0x13d   : > { %v268_v56 = vadd.f32 1e-05, %v264_v55 }
 0x13f   : > { %812 = vrsqrt.f32 %v268_v56 }
 0x141   : > { %v807_v57 = vpop.eup %806 }
 0x142   : > { %v273_v58 = vmul.f32 %v807_v57, %v879_v12 }
 0x144   : > { %v283_v63 = vmul.f32 %v689_v59, %v273_v58 }
 0x145   : > { %v809_v60 = vpop.eup %808 }
 0x146   : > { %v811_v61 = vpop.eup %810  ;;  %v274_v62 = vmul.f32 %v809_v60, %v885_v19  ;;  %v293_v4 = vadd.f32 %v690_v0, %v283_v63 }
 0x147   : > { %v275_v1 = vmul.f32 %v811_v61, %v881_v13  ;;  %v334_v13 = vshrl.u32 %v333_v14, 7 }
 0x148   : > { %v284_v2 = vmul.f32 %v689_v59, %v274_v62 }
 0x149   : > { %v813_v3 = vpop.eup %812  ;;  %v285_v7 = vmul.f32 %v689_v59, %v275_v1  ;;  %v335_v15 = vsub.s32 0, %v334_v13  ;;  %v339_v17 = vsub.s32 1, %v334_v13  ;;  %v343_v19 = vsub.s32 2, %v334_v13 }
 0x14a   : > { %v294_v5 = vadd.f32 %v690_v0, %v284_v2  ;;  %v276_v6 = vmul.f32 %v813_v3, %v887_v20 }
 0x14b   : > { %v295_v10 = vadd.f32 %v690_v0, %v285_v7  ;;  %v336_v18 = vrot.slane %v331_v16, %v335_v15  ;;  %v340_v20 = vrot.slane %v331_v16, %v339_v17  ;;  %v344_v24 = vrot.slane %v331_v16, %v343_v19 }
 0x14c   : > { %v297_v8 = vpack.c.bf16 %v294_v5, %v293_v4  ;;  %v286_v9 = vmul.f32 %v689_v59, %v276_v6 }
 0x14e   : > { %509 = vmatmul.mubr.bf16.vlgmr.msra.gmra.mrb[0].mxu0 %v297_v8  ;;  %760 = vmatprep.mubr.bf16.mxu1 %v297_v8  ;;  %v296_v11 = vadd.f32 %v690_v0, %v286_v9 }
 0x14f   : > { %518 = vmatprep.mubr.bf16.mxu0 %v822_v39 }
 0x150   : > { %v298_v12 = vpack.c.bf16 %v296_v11, %v295_v10 }
 0x152   : > { %761 = vmatmul.mubr.bf16.vlgmr.msra.gmra.mrb[0].mxu1 %v298_v12 }
 0x156   : > { %519 = vmatmul.mubr.bf16.gmra.mrb[4].mxu0 %v298_v12 }
 0x221   : > { %v510_v21 = vpop.f32.mrb[0].mxu0 }
 0x222   : > { %v511_v22 = vadd.f32 %v510_v21, %v336_v18  ;;  %v512_v23 = vpop.f32.mrb[1].mxu0 }
 0x223   : > { %v513_v25 = vadd.f32 %v512_v23, %v340_v20  ;;  %v514_v26 = vpop.f32.mrb[2].mxu0 }
 0x224   : > { %v515_v27 = vadd.f32 %v514_v26, %v336_v18  ;;  %v516_v28 = vpop.f32.mrb[3].mxu0 }
 0x225   : > { %v726_v29 = vpack.c.bf16 %v513_v25, %v511_v22  ;;  %v517_v30 = vadd.f32 %v516_v28, %v340_v20  ;;  %v762_v31 = vpop.f32.mrb[0].mxu1 }
 0x226   : > { %v572_v32 = vadd.f32 %v762_v31, %v344_v24  ;;  %v563_v33 = vpop.f32.mrb[1].mxu1 }
 0x227   : > { %618 = vst [vmem:[%s972_s10] sm:$0xff] %v726_v29  ;;  %v728_v34 = vpack.c.bf16 %v517_v30, %v515_v27  ;;  %v564_v35 = vadd.f32 %v563_v33, %v344_v24  ;;  %v763_v36 = vpop.f32.mrb[2].mxu1 }
 0x228   : > { %v731_v37 = vpack.c.bf16 %v572_v32, %v572_v32  ;;  %v575_v38 = vadd.f32 %v763_v36, %v344_v24  ;;  %v566_v39 = vpop.f32.mrb[3].mxu1 }
 0x229   : > { %620 = vst [vmem:[%s972_s10 + $0xc] sm:$0xff] %v728_v34  ;;  %v727_v40 = vpack.c.bf16 %v564_v35, %v564_v35  ;;  %v567_v41 = vadd.f32 %v566_v39, %v344_v24  ;;  %v520_v42 = vpop.f32.mrb[4].mxu0 }
 0x22a   : > { %623 = vst [vmem:[%s972_s10 + $0x20] sm:$0xf] %v731_v37  ;;  %v733_v43 = vpack.c.bf16 %v575_v38, %v575_v38  ;;  %v521_v44 = vadd.f32 %v520_v42, %v336_v18  ;;  %v522_v45 = vpop.f32.mrb[5].mxu0 }
 0x22b   : > { %619 = vst [vmem:[%s972_s10 + $0x8] sm:$0xf] %v727_v40  ;;  %v729_v46 = vpack.c.bf16 %v567_v41, %v567_v41  ;;  %v523_v47 = vadd.f32 %v522_v45, %v340_v20  ;;  %v524_v48 = vpop.f32.mrb[6].mxu0 }
 0x22c   : > { %625 = vst [vmem:[%s972_s10 + $0x2c] sm:$0xf] %v733_v43  ;;  %v525_v49 = vadd.f32 %v524_v48, %v336_v18  ;;  %v526_v50 = vpop.f32.mrb[7].mxu0 }
 0x22d   : > { %621 = vst [vmem:[%s972_s10 + $0x14] sm:$0xf] %v729_v46  ;;  %v730_v51 = vpack.c.bf16 %v523_v47, %v521_v44  ;;  %v527_v52 = vadd.f32 %v526_v50, %v340_v20 }
 0x22f   : > { %622 = vst [vmem:[%s972_s10 + $0x18] sm:$0xff] %v730_v51  ;;  %v732_v53 = vpack.c.bf16 %v527_v52, %v525_v49 }
 0x231   : > { %624 = vst [vmem:[%s972_s10 + $0x24] sm:$0xff] %v732_v53 }
 0x232 PF: > { %s15_s18 = sadd.s32 1, %s820_s18  }
 0x233   : > { %p12_p4 = scmp.ge.s32.totalorder %s15_s18, 4  }
 0x235   :  { %14 = sbr.rel (!%p12_p4) target bundleno = 1 (0x1), region = 70 }

// kernel: gpt_forward.13
= control target key start
LH: loop header
LB: loop body
LE: loop exit
PB: predicated region body
PF: predicated region fallthrough
CT: control target
= control target key end

     0   :  { %9 = vsyncpa [#allocation3], 0  ;;  %s917_s0 = inlined_call_operand.vmem [shape: f32[2,32,128], index: 0, kind: input, shape index: {}]   ;;  %s918_s1 = inlined_call_operand.vmem [shape: f32[1,128], index: 1, kind: input, shape index: {}]   ;;  %s919_s2 = inlined_call_operand.vmem [shape: f32[1,128], index: 2, kind: input, shape index: {}]   ;;  %s920_s3 = inlined_call_operand.vmem [shape: bf16[256,128], index: 3, kind: input, shape index: {}]   ;;  %s921_s4 = inlined_call_operand.hbm [shape: f32[2,32,256], index: 4, kind: output, shape index: {}]  }
   0x1   :  { %11 = vsyncpa [#allocation3 + $0x1], 0  ;;  %s760_s15 = smov 0   ;;  %s762_s16 = smov 0  }
   0x2   :  { %s764_s17 = smov 0   ;;  %s766_s18 = smov 0  }
   0x3 LB: > { %s781_s19 = sadd.s32 4294967295, %s730_s18   ;;  %s535_s20 = sadd.s32 4294967294, %s730_s18   ;;  %s730_s18 = sphi %s766_s18, %s927_s18   ;;  %s726_s17 = sphi %s764_s17, %s926_s17   ;;  %s722_s16 = sphi %s762_s16, %s925_s16   ;;  %s718_s15 = sphi %s760_s15, %s924_s15  }
   0x4   : > { %s785_s21 = sadd.s32 1, %s730_s18   ;;  %s113_s22 = sadd.s32 1, %s726_s17 }
   0x5   : > { %s110_s23 = ssub.s32 %s730_s18, %s785_s21  ;;  %p123_p0 = scmp.ne.s32.totalorder %s726_s17, %s722_s16 }
   0x6   : > { %p111_p1 = scmp.eq.s32.totalorder %s110_s23, 0  ;;  %p124_p2 = scmp.eq.s32.totalorder %s781_s19, 1 }
   0x7   : > { %p129_p3 = scmp.ne.s32.totalorder %s722_s16, %s718_s15  ;;  %p130_p4 = scmp.eq.s32.totalorder %s535_s20, 1 }
   0x8   : > { %s796_s24 = scalar_select %p111_p1, %s726_s17, %s113_s22  }
   0x9   : > { %p798_p5 = por %p124_p2, %p123_p0  ;;  %p802_p6 = por %p130_p4, %p129_p3 }
   0xa   : > { %p538_p7 = scmp.ge.s32.totalorder %s730_s18, 1  ;;  %p165_p8 = scmp.lt.s32.totalorder %s730_s18, 3 }
   0xc   : > { %p166_p9 = pnand %p538_p7, %p165_p8 }
   0xd   : > { %p191_p10 = scmp.lt.s32.totalorder (!%p166_p9), %s781_s19, 1  ;;  %v644_v4 = vld [vmem:[%s920_s3 + $0x40] sm:$0xff] (!%p166_p9)   ;;  %v646_v6 = vld [vmem:[%s920_s3 + $0x48] sm:$0xff] (!%p166_p9)   ;;  %v648_v8 = vld [vmem:[%s920_s3 + $0x50] sm:$0xff] (!%p166_p9)   ;;  %s188_s8 = sand.u32 (!%p166_p9), 1, %s722_s16  }
   0xe   : > { %169 = sbr.rel (%p166_p9) target bundleno = 578 (0x242), region = 36  ;;  %v645_v5 = vld [vmem:[%s920_s3] sm:$0xff] (!%p166_p9)   ;;  %567 = vmatprep.subr.bf16.mxu0 (!%p166_p9), %v644_v4  ;;  %587 = vmatprep.subr.bf16.mxu1 (!%p166_p9), %v644_v4  ;;  %v647_v7 = vld [vmem:[%s920_s3 + $0x8] sm:$0xff] (!%p166_p9)   ;;  %v649_v9 = vld [vmem:[%s920_s3 + $0x10] sm:$0xff] (!%p166_p9)   ;;  %s539_s9 = sshll.u32 (!%p166_p9), %s188_s8, 6 }
   0xf   : > { %568 = vmatpush3.bf16.xpose.msra.mxu0 (!%p166_p9), %v645_v5  ;;  %595 = vmatpush3.bf16.xpose.msra.mxu1 (!%p166_p9), %v645_v5  ;;  %v650_v10 = vld [vmem:[%s920_s3 + $0x58] sm:$0xff] (!%p166_p9)   ;;  %v652_v12 = vld [vmem:[%s920_s3 + $0x60] sm:$0xff] (!%p166_p9)   ;;  %v654_v30 = vld [vmem:[%s920_s3 + $0x68] sm:$0xff] (!%p166_p9)   ;;  %s190_s10 = scalar_lea.vmem (!%p166_p9), [#allocation2], %s539_s9  ;;  %s566_s12 = sshll.u32 (!%p166_p9), %s781_s19, 10 }
  0x10   : > { %569 = vmatprep.subr.bf16.mxu0 (!%p166_p9), %v646_v6  ;;  %588 = vmatprep.subr.bf16.mxu1 (!%p166_p9), %v646_v6  ;;  %v651_v11 = vld [vmem:[%s920_s3 + $0x18] sm:$0xff] (!%p166_p9)   ;;  %v653_v13 = vld [vmem:[%s920_s3 + $0x20] sm:$0xff] (!%p166_p9)   ;;  %v655_v31 = vld [vmem:[%s920_s3 + $0x28] sm:$0xff] (!%p166_p9)   ;;  %s473_s11 = sshll.u32 (!%p166_p9), %s190_s10, 4  ;;  %s874_s20 = scalar_lea.hbm (!%p166_p9), %s921_s4, %s566_s12  ;;  %s869_s11 = int_to_ptr.vmem [resolvable:$true] %s473_s11 }
  0x11   : > { %v656_v32 = vld [vmem:[%s920_s3 + $0x70] sm:$0xff] (!%p166_p9)   ;;  %v658_v34 = vld [vmem:[%s920_s3 + $0x78] sm:$0xff] (!%p166_p9)   ;;  %v542_v50 = vld [vmem:[%s918_s1] ss:$0 sm:$0xff] (!%p166_p9)  ;;  %s668_s22 = scalar_lea.vmem (!%p166_p9), %s869_s11, 1024  ;;  %s732_s23 = smov (!%p166_p9), [#allocation2]  }
  0x12   : > { %v657_v33 = vld [vmem:[%s920_s3 + $0x30] sm:$0xff] (!%p166_p9)   ;;  %v659_v35 = vld [vmem:[%s920_s3 + $0x38] sm:$0xff] (!%p166_p9)   ;;  %v543_v55 = vld [vmem:[%s919_s2] ss:$0 sm:$0xff] (!%p166_p9)  ;;  %p669_p11 = scmp.ne.s32.totalorder (!%p166_p9), %s869_s11, %s668_s22 }
  0x14   : > { %p670_p12 = pnand (!%p166_p9), %p669_p11, %p798_p5 }
  0x15   : > { %s192_s27 = scalar_select %p191_p10, %s781_s19, 1 }
  0x16   : > { %s876_s19 = scalar_lea.sflag [#allocation3], %s188_s8  ;;  %p671_p13 = pneg %p670_p12 }
  0x17   : > { %s565_s28 = sshll.u32 %s192_s27, 5  ;;  %570 = vmatpush3.bf16.xpose.msra.mxu0 %v647_v7  ;;  %596 = vmatpush3.bf16.xpose.msra.mxu1 %v647_v7  ;;  %s672_s27 = sshll.u32 %s732_s23, 4  ;;  %s673_s27 = int_to_ptr.vmem [resolvable:$false] %s672_s27 }
  0x18   : > { %s195_s5 = scalar_lea.vmem %s917_s0, %s565_s28  ;;  %571 = vmatprep.subr.bf16.mxu0 %v648_v8  ;;  %589 = vmatprep.subr.bf16.mxu1 %v648_v8  ;;  %s674_s28 = scalar_lea.vmem %s673_s27, 2048 }
  0x19   : > { %v197_v0 = vld [vmem:[%s195_s5] sm:$0xff]  ;;  %v199_v1 = vld [vmem:[%s195_s5 + $0x10] sm:$0xff]  ;;  %v198_v2 = vld [vmem:[%s195_s5 + $0x8] sm:$0xff]  ;;  %p675_p0 = scmp.lt.s32.totalorder %s869_s11, %s673_s27  ;;  %p676_p1 = scmp.lt.s32.totalorder %s674_s28, %s668_s22 }
  0x1a   : > { %203 = vadd.xlane.f32.xlu0 %v197_v0  ;;  %207 = vadd.xlane.f32.xlu1 %v199_v1  ;;  %v200_v3 = vld [vmem:[%s195_s5 + $0x18] sm:$0xff] }
  0x1b   : > { %p677_p2 = por %p676_p1, %p675_p0 }
  0x1d   : > { %p678_p3 = pnand %p677_p2, %p671_p13 }
  0x1e   : > { %205 = vadd.xlane.f32.xlu0 %v198_v2  ;;  %209 = vadd.xlane.f32.xlu1 %v200_v3 }
  0x1f   : > { %572 = vmatpush3.bf16.xpose.msra.mxu0 %v649_v9  ;;  %597 = vmatpush3.bf16.xpose.msra.mxu1 %v649_v9 }
  0x20   : > { %573 = vmatprep.subr.bf16.mxu0 %v650_v10  ;;  %590 = vmatprep.subr.bf16.mxu1 %v650_v10 }
  0x27   : > { %574 = vmatpush3.bf16.xpose.msra.mxu0 %v651_v11  ;;  %598 = vmatpush3.bf16.xpose.msra.mxu1 %v651_v11 }
  0x28   : > { %575 = vmatprep.subr.bf16.mxu0 %v652_v12  ;;  %591 = vmatprep.subr.bf16.mxu1 %v652_v12 }
  0x2f   : > { %576 = vmatpush3.bf16.xpose.msra.mxu0 %v653_v13  ;;  %599 = vmatpush3.bf16.xpose.msra.mxu1 %v653_v13 }
  0x30   : > { %577 = vmatprep.subr.bf16.mxu0 %v654_v30  ;;  %592 = vmatprep.subr.bf16.mxu1 %v654_v30 }
  0x37   : > { %578 = vmatpush3.bf16.xpose.msra.mxu0 %v655_v31  ;;  %600 = vmatpush3.bf16.xpose.msra.mxu1 %v655_v31 }
  0x38   : > { %579 = vmatprep.subr.bf16.mxu0 %v656_v32  ;;  %593 = vmatprep.subr.bf16.mxu1 %v656_v32 }
  0x3f   : > { %580 = vmatpush3.bf16.xpose.msra.mxu0 %v657_v33  ;;  %601 = vmatpush3.bf16.xpose.msra.mxu1 %v657_v33 }
  0x40   : > { %581 = vmatprep.subr.bf16.mxu0 %v658_v34  ;;  %594 = vmatprep.subr.bf16.mxu1 %v658_v34 }
  0x47   : > { %582 = vmatpush3.bf16.xpose.msra.mxu0 %v659_v35  ;;  %602 = vmatpush3.bf16.xpose.msra.mxu1 %v659_v35 }
  0xa7   : > { %v204_v14 = vpop.xlane.xlu0 %203  ;;  %v208_v15 = vpop.xlane.xlu1 %207 }
  0xa8   : > { %v212_v16 = vmul.f32 0.0078125, %v204_v14  ;;  %v214_v17 = vmul.f32 0.0078125, %v208_v15 }
  0xaa   : > { %v216_v18 = vsub.f32 %v197_v0, %v212_v16  ;;  %v218_v19 = vsub.f32 %v199_v1, %v214_v17 }
  0xab   : > { %v206_v20 = vpop.xlane.xlu0 %205  ;;  %v210_v21 = vpop.xlane.xlu1 %209 }
  0xac   : > { %v213_v22 = vmul.f32 0.0078125, %v206_v20  ;;  %v220_v23 = vmul.f32 %v216_v18, %v216_v18  ;;  %v215_v24 = vmul.f32 0.0078125, %v210_v21  ;;  %v222_v27 = vmul.f32 %v218_v19, %v218_v19 }
  0xae   : > { %v217_v25 = vsub.f32 %v198_v2, %v213_v22  ;;  %224 = vadd.xlane.f32.xlu0 %v220_v23  ;;  %v219_v26 = vsub.f32 %v200_v3, %v215_v24 }
  0xb0   : > { %v221_v28 = vmul.f32 %v217_v25, %v217_v25  ;;  %v223_v29 = vmul.f32 %v219_v26, %v219_v26 }
  0xb2   : > { %228 = vadd.xlane.f32.xlu0 %v222_v27  ;;  %226 = vadd.xlane.f32.xlu1 %v221_v28 }
  0xb6   : > { %230 = vadd.xlane.f32.xlu1 %v223_v29 }
 0x13b   : > { %v225_v36 = vpop.xlane.xlu0 %224 }
 0x13c   : > { %v232_v37 = vmul.f32 0.0078125, %v225_v36 }
 0x13e   : > { %v236_v38 = vadd.f32 1e-05, %v232_v37 }
 0x13f   : > { %v227_v39 = vpop.xlane.xlu1 %226  ;;  %v229_v40 = vpop.xlane.xlu0 %228 }
 0x140   : > { %660 = vrsqrt.f32 %v236_v38  ;;  %v233_v41 = vmul.f32 0.0078125, %v227_v39  ;;  %v234_v42 = vmul.f32 0.0078125, %v229_v40 }
 0x142   : > { %v237_v43 = vadd.f32 1e-05, %v233_v41  ;;  %v238_v44 = vadd.f32 1e-05, %v234_v42 }
 0x143   : > { %v231_v45 = vpop.xlane.xlu1 %230 }
 0x144   : > { %662 = vrsqrt.f32 %v237_v43  ;;  %v235_v46 = vmul.f32 0.0078125, %v231_v45 }
 0x145   : > { %664 = vrsqrt.f32 %v238_v44 }
 0x146   : > { %v239_v47 = vadd.f32 1e-05, %v235_v46 }
 0x148   : > { %666 = vrsqrt.f32 %v239_v47 }
 0x14a   : > { %v661_v48 = vpop.eup %660 }
 0x14b   : > { %v244_v49 = vmul.f32 %v661_v48, %v216_v18 }
 0x14d   : > { %v254_v54 = vmul.f32 %v542_v50, %v244_v49 }
 0x14e   : > { %v663_v51 = vpop.eup %662 }
 0x14f   : > { %v665_v52 = vpop.eup %664  ;;  %v245_v53 = vmul.f32 %v663_v51, %v217_v25  ;;  %v264_v59 = vadd.f32 %v543_v55, %v254_v54 }
 0x150   : > { %v246_v56 = vmul.f32 %v665_v52, %v218_v19 }
 0x151   : > { %v255_v57 = vmul.f32 %v542_v50, %v245_v53 }
 0x152   : > { %v667_v58 = vpop.eup %666  ;;  %v256_v62 = vmul.f32 %v542_v50, %v246_v56 }
 0x153   : > { %v265_v60 = vadd.f32 %v543_v55, %v255_v57  ;;  %v247_v61 = vmul.f32 %v667_v58, %v219_v26 }
 0x154   : > { %v266_v1 = vadd.f32 %v543_v55, %v256_v62 }
 0x155   : > { %v268_v63 = vpack.c.bf16 %v265_v60, %v264_v59  ;;  %v257_v0 = vmul.f32 %v542_v50, %v247_v61 }
 0x157   : > { %583 = vmatprep.mubr.bf16.mxu0 %v268_v63  ;;  %v267_v2 = vadd.f32 %v543_v55, %v257_v0 }
 0x158   : > { %584 = vmatmul.mubr.bf16.vlgmr.msra.gmra.mrb[0].mxu0 %v268_v63 }
 0x159   : > { %v269_v3 = vpack.c.bf16 %v267_v2, %v266_v1 }
 0x15b   : > { %585 = vmatprep.mubr.bf16.mxu1 %v269_v3 }
 0x15c   : > { %586 = vmatmul.mubr.bf16.vlgmr.msra.gmra.mrb[0].mxu1 %v269_v3 }
 0x22b   : > { %v432_v4 = vpop.f32.mrb[0].mxu0 }
 0x22c   : > { %451 = vst [vmem:[%s190_s10] sm:$0xff] %v432_v4  ;;  %v434_v5 = vpop.f32.mrb[1].mxu0 }
 0x22d   : > { %452 = vst [vmem:[%s190_s10 + $0x8] sm:$0xff] %v434_v5  ;;  %v436_v6 = vpop.f32.mrb[2].mxu0 }
 0x22e   : > { %453 = vst [vmem:[%s190_s10 + $0x10] sm:$0xff] %v436_v6  ;;  %v438_v7 = vpop.f32.mrb[3].mxu0 }
 0x22f   : > { %454 = vst [vmem:[%s190_s10 + $0x18] sm:$0xff] %v438_v7  ;;  %v442_v8 = vpop.f32.mrb[0].mxu1 }
 0x230   : > { %455 = vst [vmem:[%s190_s10 + $0x20] sm:$0xff] %v442_v8  ;;  %v444_v9 = vpop.f32.mrb[1].mxu1 }
 0x231   : > { %456 = vst [vmem:[%s190_s10 + $0x28] sm:$0xff] %v444_v9  ;;  %v446_v10 = vpop.f32.mrb[2].mxu1 }
 0x232   : > { %457 = vst [vmem:[%s190_s10 + $0x30] sm:$0xff] %v446_v10  ;;  %v448_v11 = vpop.f32.mrb[3].mxu1 }
 0x233   : > { %458 = vst [vmem:[%s190_s10 + $0x38] sm:$0xff] %v448_v11 }
 0x234   : > { %681 = shalt.err (!%p678_p3)
}
 0x235   : > { %s682_s29 = scalar_lea.hbm %s874_s20, 1024  ;;  %s686_s6 = scalar_lea.hbm %s921_s4, 2048 }
 0x236   : > { %p683_p4 = scmp.ne.s32.totalorder %s874_s20, %s682_s29  ;;  %p687_p9 = scmp.lt.u32.totalorder %s874_s20, %s921_s4 }
 0x237   : > { %p688_p10 = scmp.lt.u32.totalorder %s686_s6, %s682_s29  ;;  %p690_p12 = scmp.lt.u32.totalorder %s682_s29, %s874_s20 }
 0x238   : > { %p684_p7 = pnand %p683_p4, %p798_p5 }
 0x239   : > { %p689_p11 = por %p688_p10, %p687_p9 }
 0x23a   : > { %p685_p8 = pneg %p684_p7 }
 0x23b   : > { %p691_p13 = por %p690_p12, %p689_p11 }
 0x23d   : > { %p692_p0 = pnand %p691_p13, %p685_p8 }
 0x23f   : > { %695 = shalt.err (!%p692_p0)
}
 0x240   : > { %s733_s9 = smov 256   ;;  %s734_s10 = smov 16  }
 0x241   : > { %603 = dma.vmem_to_hbm [thread:$0]  (%p798_p5), %s869_s11, 1024, %s874_s20, %s876_s19, %s733_s9, %s733_s9, %s734_s10  }
 0x242 PF: > { %p609_p1 = scmp.ge.s32.totalorder %s730_s18, 2  ;;  %s488_s12 = sand.u32 1, %s718_s15  }
 0x243   : > { %s489_s13 = scalar_lea.sflag [#allocation3], %s488_s12 }
 0x244   : > { %p606_p2 = pnand %p609_p1, %p802_p6 }
 0x246   : > { %713 = dma.done.wait (!%p606_p2), %s489_s13, 1024  }
 0x247   : > { %715 = vsyncadd (!%p606_p2), %s489_s13, 4294966272  ;;  %p14_p3 = scmp.ge.s32.totalorder %s785_s21, 4   ;;  %s924_s15 = smov %s722_s16 }
 0x248   : > { %s925_s16 = smov %s726_s17  ;;  %s926_s17 = smov %s796_s24 }
 0x249   : > { %s927_s18 = smov %s785_s21  ;;  %16 = sbr.rel (!%p14_p3) target bundleno = 3 (0x3), region = 71 }
 0x250   :  { %494 = vsyncpa [#allocation3], 1 }
 0x251   :  { %496 = vsyncpa [#allocation3 + $0x1], 1 }

// kernel: gpt_forward.9
= control target key start
LH: loop header
LB: loop body
LE: loop exit
PB: predicated region body
PF: predicated region fallthrough
CT: control target
= control target key end

     0   :  { %s1891_s13 = smov 0   ;;  %s2381_s0 = inlined_call_operand.vmem [shape: f32[2,32,128], index: 0, kind: input, shape index: {}]   ;;  %s2382_s1 = inlined_call_operand.vmem [shape: f32[2,32,128], index: 1, kind: input, shape index: {}]   ;;  %s2383_s2 = inlined_call_operand.vmem [shape: bf16[128,128], index: 2, kind: input, shape index: {}]   ;;  %s2384_s3 = inlined_call_operand.vmem [shape: f32[1,128], index: 3, kind: input, shape index: {}]   ;;  %s2385_s4 = inlined_call_operand.vmem [shape: f32[1,128], index: 4, kind: input, shape index: {}]   ;;  %s2386_s5 = inlined_call_operand.vmem [shape: f32[1,128], index: 5, kind: input, shape index: {}]   ;;  %s2387_s6 = inlined_call_operand.vmem [shape: bf16[128,512], index: 6, kind: input, shape index: {}]   ;;  %s2388_s7 = inlined_call_operand.vmem [shape: f32[1,512], index: 7, kind: input, shape index: {}]   ;;  %s2389_s8 = inlined_call_operand.vmem [shape: bf16[512,128], index: 8, kind: input, shape index: {}]   ;;  %s2390_s9 = inlined_call_operand.vmem [shape: f32[1,128], index: 9, kind: input, shape index: {}]   ;;  %s2391_s10 = inlined_call_operand.vmem [shape: f32[2,32,128], index: 10, kind: output, shape index: {}]  }
   0x1 LB: > { %s1496_s14 = sadd.s32 4294967295, %s1833_s13   ;;  %p1500_p0 = scmp.ge.s32.totalorder %s1833_s13, 1  ;;  %s1833_s13 = sphi %s1891_s13, %s20_s13  }
   0x2   : > { %p322_p1 = scmp.lt.s32.totalorder %s1833_s13, 3 }
   0x4   : > { %p323_p2 = pnand %p1500_p0, %p322_p1 }
   0x5   : > { %v1699_v0 = vld [vmem:[%s2383_s2] sm:$0xff] (!%p323_p2)   ;;  %p365_p3 = scmp.lt.s32.totalorder (!%p323_p2), %s1496_s14, 1  ;;  %v1700_v1 = vld [vmem:[%s2383_s2 + $0x8] sm:$0xff] (!%p323_p2)   ;;  %v1701_v2 = vld [vmem:[%s2383_s2 + $0x10] sm:$0xff] (!%p323_p2)  }
   0x6   : > { %326 = sbr.rel (%p323_p2) target bundleno = 1083 (0x43b), region = 60  ;;  %1654 = vmatprep.subr.bf16.mxu0 (!%p323_p2), %v1699_v0  ;;  %v1702_v3 = vld [vmem:[%s2383_s2 + $0x18] sm:$0xff] (!%p323_p2)   ;;  %v1703_v7 = vld [vmem:[%s2383_s2 + $0x20] sm:$0xff] (!%p323_p2)   ;;  %v1704_v8 = vld [vmem:[%s2383_s2 + $0x28] sm:$0xff] (!%p323_p2)  }
   0x7   : > { %1655 = vmatpush3.bf16.msra.mxu0 (!%p323_p2), %v1699_v0  ;;  %v1705_v9 = vld [vmem:[%s2383_s2 + $0x30] sm:$0xff] (!%p323_p2)   ;;  %v1706_v10 = vld [vmem:[%s2383_s2 + $0x38] sm:$0xff] (!%p323_p2)   ;;  %v1507_v14 = vld [vmem:[%s2384_s3] ss:$0 sm:$0xff] (!%p323_p2) }
   0x8   : > { %1656 = vmatprep.subr.bf16.mxu0 (!%p323_p2), %v1700_v1  ;;  %v1707_v31 = vld [vmem:[%s2387_s6 + $0x4] ss:$16 sps:$4 sm:$0xff] (!%p323_p2)   ;;  %v1709_v32 = vld [vmem:[%s2387_s6 + $0x8] ss:$16 sps:$4 sm:$0xff] (!%p323_p2)   ;;  %v1711_v33 = vld [vmem:[%s2387_s6 + $0xc] ss:$16 sps:$4 sm:$0xff] (!%p323_p2)  }
   0x9   : > { %v1712_v34 = vld [vmem:[%s2387_s6] ss:$16 sps:$4 sm:$0xff] (!%p323_p2)   ;;  %v1713_v35 = vld [vmem:[%s2387_s6 + $0x24] ss:$16 sps:$4 sm:$0xff] (!%p323_p2)   ;;  %798 = vmatprep.subr.bf16.mxu1 (!%p323_p2), %v1707_v31  ;;  %v1717_v36 = vld [vmem:[%s2387_s6 + $0x2c] ss:$16 sps:$4 sm:$0xff] (!%p323_p2)  }
   0xa   : > { %799 = vmatpush1.bf16.msra.mxu1 (!%p323_p2), %v1712_v34  ;;  %v1715_v37 = vld [vmem:[%s2387_s6 + $0x28] ss:$16 sps:$4 sm:$0xff] (!%p323_p2)   ;;  %v1718_v54 = vld [vmem:[%s2387_s6 + $0x20] ss:$16 sps:$4 sm:$0xff] (!%p323_p2)   ;;  %v1719_v55 = vld [vmem:[%s2387_s6 + $0x44] ss:$16 sps:$4 sm:$0xff] (!%p323_p2)  }
   0xb   : > { %1657 = vmatpush3.bf16.msra.mxu0 (!%p323_p2), %v1700_v1  ;;  %800 = vmatprep.subr.bf16.mxu1 (!%p323_p2), %v1713_v35  ;;  %v1723_v56 = vld [vmem:[%s2387_s6 + $0x4c] ss:$16 sps:$4 sm:$0xff] (!%p323_p2)   ;;  %v1721_v57 = vld [vmem:[%s2387_s6 + $0x48] ss:$16 sps:$4 sm:$0xff] (!%p323_p2)   ;;  %v1724_v58 = vld [vmem:[%s2387_s6 + $0x40] ss:$16 sps:$4 sm:$0xff] (!%p323_p2)  }
   0xc   : > { %1658 = vmatprep.subr.bf16.mxu0 (!%p323_p2), %v1701_v2  ;;  %v1725_v59 = vld [vmem:[%s2387_s6 + $0x64] ss:$16 sps:$4 sm:$0xff] (!%p323_p2)   ;;  %v1729_v60 = vld [vmem:[%s2387_s6 + $0x6c] ss:$16 sps:$4 sm:$0xff] (!%p323_p2)   ;;  %v1727_v61 = vld [vmem:[%s2387_s6 + $0x68] ss:$16 sps:$4 sm:$0xff] (!%p323_p2)  }
   0xd   : > { %s2393_s14 = smov (!%p365_p3, %s1496_s14), 1  ;;  %v1730_v62 = vld [vmem:[%s2387_s6 + $0x60] ss:$16 sps:$4 sm:$0xff]   ;;  %v1731_v63 = vld [vmem:[%s2387_s6 + $0x84] ss:$16 sps:$4 sm:$0xff]  }
   0xe   : > { %s1908_s21 = sshll.u32 %s2393_s14, 5  ;;  %801 = vmatpush1.bf16.msra.mxu1 %v1718_v54  ;;  %v1735_v0 = vld [vmem:[%s2387_s6 + $0x8c] ss:$16 sps:$4 sm:$0xff]   ;;  %v1733_v1 = vld [vmem:[%s2387_s6 + $0x88] ss:$16 sps:$4 sm:$0xff]   ;;  %v1755_v54 = vld [vmem:[%s2389_s8 + $0x40] sm:$0xff]  }
   0xf   : > { %s374_s24 = scalar_lea.vmem %s2382_s1, %s1908_s21  ;;  %1659 = vmatpush3.bf16.msra.mxu0 %v1701_v2  ;;  %s369_s18 = scalar_lea.vmem %s2381_s0, %s1908_s21  ;;  %802 = vmatprep.subr.bf16.mxu1 %v1719_v55  ;;  %v1736_v2 = vld [vmem:[%s2387_s6 + $0x80] ss:$16 sps:$4 sm:$0xff]  }
  0x10   : > { %v385_v4 = vld [vmem:[%s374_s24] sm:$0xff]  ;;  %v386_v5 = vld [vmem:[%s374_s24 + $0x8] sm:$0xff]  ;;  %1660 = vmatprep.subr.bf16.mxu0 %v1702_v3  ;;  %v387_v11 = vld [vmem:[%s374_s24 + $0x10] sm:$0xff]  ;;  %s379_s15 = scalar_lea.vmem %s2391_s10, %s1908_s21 }
  0x11   : > { %v389_v6 = vpack.c.bf16 %v386_v5, %v385_v4  ;;  %v388_v12 = vld [vmem:[%s374_s24 + $0x18] sm:$0xff]  ;;  %v383_v15 = vld [vmem:[%s369_s18 + $0x10] sm:$0xff]  ;;  %v381_v18 = vld [vmem:[%s369_s18] sm:$0xff] }
  0x12   : > { %v390_v13 = vpack.c.bf16 %v388_v12, %v387_v11  ;;  %v384_v21 = vld [vmem:[%s369_s18 + $0x18] sm:$0xff]  ;;  %v382_v25 = vld [vmem:[%s369_s18 + $0x8] sm:$0xff]  ;;  %803 = vmatpush1.bf16.msra.mxu1 %v1724_v58  ;;  %v1749_v11 = vld [vmem:[%s2387_s6 + $0xe4] ss:$16 sps:$4 sm:$0xff]  }
  0x13   : > { %1670 = vmatprep.mubr.bf16.mxu0 %v389_v6  ;;  %1661 = vmatpush3.bf16.msra.mxu0 %v1702_v3  ;;  %v1737_v3 = vld [vmem:[%s2387_s6 + $0xa4] ss:$16 sps:$4 sm:$0xff]   ;;  %v1741_v4 = vld [vmem:[%s2387_s6 + $0xac] ss:$16 sps:$4 sm:$0xff]   ;;  %v1739_v5 = vld [vmem:[%s2387_s6 + $0xa8] ss:$16 sps:$4 sm:$0xff]  }
  0x14   : > { %1662 = vmatprep.subr.bf16.mxu0 %v1703_v7  ;;  %804 = vmatprep.subr.bf16.mxu1 %v1725_v59  ;;  %v1742_v6 = vld [vmem:[%s2387_s6 + $0xa0] ss:$16 sps:$4 sm:$0xff]   ;;  %v1753_v12 = vld [vmem:[%s2387_s6 + $0xec] ss:$16 sps:$4 sm:$0xff]  }
  0x15   : > { %v1516_v34 = vld [vmem:[%s2385_s4] ss:$0 sm:$0xff]  ;;  %v2098_v58 = vld [vmem:[%s2389_s8 + $0xc8] sm:$0xff]  }
  0x16   : > { %805 = vmatpush1.bf16.msra.mxu1 %v1730_v62  ;;  %v2086_v55 = vld [vmem:[%s2389_s8 + $0x80] sm:$0xff]   ;;  %v2103_v59 = vld [vmem:[%s2389_s8 + $0x88] sm:$0xff]   ;;  %v2116_v62 = vld [vmem:[%s2389_s8 + $0xd0] sm:$0xff]  }
  0x17   : > { %1663 = vmatpush3.bf16.msra.mxu0 %v1703_v7  ;;  %806 = vmatprep.subr.bf16.mxu1 %v1731_v63  ;;  %v1743_v7 = vld [vmem:[%s2387_s6 + $0xc4] ss:$16 sps:$4 sm:$0xff]  }
  0x18   : > { %1664 = vmatprep.subr.bf16.mxu0 %v1704_v8  ;;  %v2122_v63 = vld [vmem:[%s2389_s8 + $0x90] sm:$0xff]  }
  0x1a   : > { %807 = vmatpush1.bf16.msra.mxu1 %v1736_v2  ;;  %v2134_v2 = vld [vmem:[%s2389_s8 + $0xd8] sm:$0xff]  }
  0x1b   : > { %1665 = vmatpush3.bf16.msra.mxu0 %v1704_v8  ;;  %808 = vmatprep.subr.bf16.mxu1 %v1737_v3  ;;  %v1747_v8 = vld [vmem:[%s2387_s6 + $0xcc] ss:$16 sps:$4 sm:$0xff]  }
  0x1c   : > { %1666 = vmatprep.subr.bf16.mxu0 %v1705_v9  ;;  %v2139_v3 = vld [vmem:[%s2389_s8 + $0x98] sm:$0xff]  }
  0x1e   : > { %809 = vmatpush1.bf16.msra.mxu1 %v1742_v6  ;;  %v2152_v6 = vld [vmem:[%s2389_s8 + $0xe0] sm:$0xff]  }
  0x1f   : > { %1667 = vmatpush3.bf16.msra.mxu0 %v1705_v9  ;;  %v1745_v9 = vld [vmem:[%s2387_s6 + $0xc8] ss:$16 sps:$4 sm:$0xff]   ;;  %810 = vmatprep.subr.bf16.mxu1 %v1743_v7  ;;  %v2157_v7 = vld [vmem:[%s2389_s8 + $0xa0] sm:$0xff]  }
  0x20   : > { %1668 = vmatprep.subr.bf16.mxu0 %v1706_v10 }
  0x23   : > { %1669 = vmatpush3.bf16.msra.mxu0 %v1706_v10  ;;  %v1748_v10 = vld [vmem:[%s2387_s6 + $0xc0] ss:$16 sps:$4 sm:$0xff]  }
  0x24   : > { %851 = vmatprep.subr.bf16.mxu0 %v1711_v33  ;;  %811 = vmatpush1.bf16.msra.mxu1 %v1748_v10  ;;  %v2170_v10 = vld [vmem:[%s2389_s8 + $0xe8] sm:$0xff]  }
  0x25   : > { %812 = vmatprep.subr.bf16.mxu1 %v1749_v11  ;;  %v2175_v11 = vld [vmem:[%s2389_s8 + $0xa8] sm:$0xff]  }
  0x26   : > { %1671 = vmatmul.mubr.bf16.vlgmr.msra.gmra.mrb[0].mxu0 %v390_v13  ;;  %v1835_v13 = vmov 0  }
  0x27   : > { %852 = vmatpush1.bf16.msra.mxu0 %v1709_v32  ;;  %830 = vmatprep.mubr.bf16.mxu1 %v1835_v13 }
  0x28   : > { %853 = vmatprep.subr.bf16.mxu0 %v1717_v36  ;;  %883 = vmatprep.mubr.bf16.mxu0 %v1835_v13 }
  0x2b   : > { %854 = vmatpush1.bf16.msra.mxu0 %v1715_v37 }
  0x2c   : > { %855 = vmatprep.subr.bf16.mxu0 %v1723_v56  ;;  %v1759_v56 = vld [vmem:[%s2389_s8 + $0x48] sm:$0xff]  }
  0x2f   : > { %856 = vmatpush1.bf16.msra.mxu0 %v1721_v57  ;;  %v1760_v57 = vld [vmem:[%s2389_s8 + $0x8] sm:$0xff]  }
  0x30   : > { %857 = vmatprep.subr.bf16.mxu0 %v1729_v60  ;;  %v1763_v60 = vld [vmem:[%s2389_s8 + $0x50] sm:$0xff]  }
  0x33   : > { %858 = vmatpush1.bf16.msra.mxu0 %v1727_v61  ;;  %v1764_v61 = vld [vmem:[%s2389_s8 + $0x10] sm:$0xff]  }
  0x34   : > { %859 = vmatprep.subr.bf16.mxu0 %v1735_v0  ;;  %v1767_v0 = vld [vmem:[%s2389_s8 + $0x58] sm:$0xff]  }
  0x37   : > { %860 = vmatpush1.bf16.msra.mxu0 %v1733_v1  ;;  %v1768_v1 = vld [vmem:[%s2389_s8 + $0x18] sm:$0xff]  }
  0x38   : > { %861 = vmatprep.subr.bf16.mxu0 %v1741_v4  ;;  %v1771_v4 = vld [vmem:[%s2389_s8 + $0x60] sm:$0xff]  }
  0x3b   : > { %862 = vmatpush1.bf16.msra.mxu0 %v1739_v5  ;;  %v1772_v5 = vld [vmem:[%s2389_s8 + $0x20] sm:$0xff]  }
  0x3c   : > { %863 = vmatprep.subr.bf16.mxu0 %v1747_v8  ;;  %v1775_v8 = vld [vmem:[%s2389_s8 + $0x68] sm:$0xff]  }
  0x3f   : > { %864 = vmatpush1.bf16.msra.mxu0 %v1745_v9  ;;  %v1776_v9 = vld [vmem:[%s2389_s8 + $0x28] sm:$0xff]  }
  0x40   : > { %865 = vmatprep.subr.bf16.mxu0 %v1753_v12  ;;  %v1779_v12 = vld [vmem:[%s2389_s8 + $0x70] sm:$0xff]  }
  0xf9   : > { %v1672_v16 = vpop.f32.mrb[0].mxu0 }
  0xfa   : > { %v505_v17 = vadd.f32 %v1672_v16, %v1507_v14  ;;  %v496_v19 = vpop.f32.mrb[1].mxu0 }
  0xfb   : > { %v497_v20 = vadd.f32 %v1507_v14, %v496_v19  ;;  %v1673_v22 = vpop.f32.mrb[2].mxu0 }
  0xfc   : > { %v1936_v23 = vadd.f32 %v505_v17, %v383_v15  ;;  %v508_v24 = vadd.f32 %v1673_v22, %v1507_v14  ;;  %v499_v26 = vpop.f32.mrb[3].mxu0  ;;  %v1754_v15 = vld [vmem:[%s2387_s6 + $0xe0] ss:$16 sps:$4 sm:$0xff]  }
  0xfd   : > { %v1938_v27 = vadd.f32 %v497_v20, %v381_v18  ;;  %v500_v28 = vadd.f32 %v1507_v14, %v499_v26  ;;  %v1751_v14 = vld [vmem:[%s2387_s6 + $0xe8] ss:$16 sps:$4 sm:$0xff]   ;;  %813 = vmatpush1.bf16.msra.mxu1 %v1754_v15  ;;  %v2193_v15 = vld [vmem:[%s2389_s8 + $0xb0] sm:$0xff]  }
  0xfe   : > { %v1940_v29 = vadd.f32 %v508_v24, %v384_v21  ;;  %521 = vadd.xlane.f32.xlu1 %v1936_v23  ;;  %866 = vmatpush1.bf16.msra.mxu0 %v1751_v14  ;;  %v2187_v14 = vld [vmem:[%s2389_s8 + $0xf0] sm:$0xff]  }
  0xff   : > { %v1943_v30 = vadd.f32 %v500_v28, %v382_v25  ;;  %517 = vadd.xlane.f32.xlu0 %v1938_v27  ;;  %1598 = vmatprep.subr.bf16.mxu1 %v1755_v54 }
 0x102   : > { %523 = vadd.xlane.f32.xlu1 %v1940_v29 }
 0x103   : > { %519 = vadd.xlane.f32.xlu0 %v1943_v30 }
 0x18b   : > { %v522_v38 = vpop.xlane.xlu1 %521 }
 0x18c   : > { %v518_v39 = vpop.xlane.xlu0 %517  ;;  %v528_v40 = vmul.f32 0.0078125, %v522_v38 }
 0x18d   : > { %v526_v41 = vmul.f32 0.0078125, %v518_v39  ;;  %v1517_v39 = vld [vmem:[%s2386_s5] ss:$0 sm:$0xff] }
 0x18e   : > { %v1973_v45 = vsub.f32 %v1936_v23, %v528_v40 }
 0x18f   : > { %v1970_v42 = vsub.f32 %v1938_v27, %v526_v41  ;;  %v524_v43 = vpop.xlane.xlu1 %523 }
 0x190   : > { %v520_v44 = vpop.xlane.xlu0 %519  ;;  %v529_v46 = vmul.f32 0.0078125, %v524_v43  ;;  %v536_v51 = vmul.f32 %v1973_v45, %v1973_v45 }
 0x191   : > { %v527_v47 = vmul.f32 0.0078125, %v520_v44  ;;  %v534_v48 = vmul.f32 %v1970_v42, %v1970_v42 }
 0x192   : > { %v1981_v50 = vsub.f32 %v1940_v29, %v529_v46 }
 0x193   : > { %v1978_v49 = vsub.f32 %v1943_v30, %v527_v47  ;;  %538 = vadd.xlane.f32.xlu0 %v534_v48 }
 0x194   : > { %v537_v53 = vmul.f32 %v1981_v50, %v1981_v50 }
 0x195   : > { %v535_v52 = vmul.f32 %v1978_v49, %v1978_v49 }
 0x197   : > { %542 = vadd.xlane.f32.xlu0 %v536_v51  ;;  %540 = vadd.xlane.f32.xlu1 %v535_v52 }
 0x19b   : > { %544 = vadd.xlane.f32.xlu1 %v537_v53 }
 0x220   : > { %v539_v16 = vpop.xlane.xlu0 %538 }
 0x221   : > { %v546_v17 = vmul.f32 0.0078125, %v539_v16  ;;  %v1783_v16 = vld [vmem:[%s2389_s8 + $0x78] sm:$0xff]  }
 0x223   : > { %v550_v18 = vadd.f32 1e-05, %v546_v17  ;;  %v2202_v17 = vld [vmem:[%s2389_s8 + $0xf8] sm:$0xff]  }
 0x224   : > { %v541_v19 = vpop.xlane.xlu1 %540  ;;  %v543_v20 = vpop.xlane.xlu0 %542 }
 0x225   : > { %1787 = vrsqrt.f32 %v550_v18  ;;  %v547_v21 = vmul.f32 0.0078125, %v541_v19  ;;  %v548_v22 = vmul.f32 0.0078125, %v543_v20  ;;  %v1784_v18 = vld [vmem:[%s2389_s8 + $0x38] sm:$0xff]   ;;  %v618_v20 = vlaneseq }
 0x226   : > { %v2211_v19 = vld [vmem:[%s2389_s8 + $0xb8] sm:$0xff]  }
 0x227   : > { %v551_v24 = vadd.f32 1e-05, %v547_v21  ;;  %v552_v25 = vadd.f32 1e-05, %v548_v22  ;;  %v619_v21 = vshrl.u32 %v618_v20, 7 }
 0x228   : > { %v545_v26 = vpop.xlane.xlu1 %544 }
 0x229   : > { %1789 = vrsqrt.f32 %v551_v24  ;;  %v549_v28 = vmul.f32 0.0078125, %v545_v26  ;;  %v620_v22 = vsub.s32 0, %v619_v21  ;;  %v628_v24 = vsub.s32 2, %v619_v21 }
 0x22a   : > { %1791 = vrsqrt.f32 %v552_v25  ;;  %v616_v25 = vld [vmem:[%s2388_s7] sm:$0xf]  ;;  %v624_v26 = vsub.s32 1, %v619_v21 }
 0x22b   : > { %v553_v31 = vadd.f32 1e-05, %v549_v28  ;;  %v632_v28 = vsub.s32 3, %v619_v21 }
 0x22d   : > { %1793 = vrsqrt.f32 %v553_v31  ;;  %v2218_v31 = vrot.slane %v616_v25, %v620_v22 }
 0x22f   : > { %v1788_v32 = vpop.eup %1787 }
 0x230   : > { %v558_v33 = vmul.f32 %v1788_v32, %v1970_v42  ;;  %v2220_v32 = vrot.slane %v616_v25, %v628_v24 }
 0x232   : > { %v568_v37 = vmul.f32 %v1516_v34, %v558_v33  ;;  %v2222_v33 = vrot.slane %v616_v25, %v624_v26 }
 0x233   : > { %v1790_v35 = vpop.eup %1789 }
 0x234   : > { %v559_v36 = vmul.f32 %v1790_v35, %v1978_v49  ;;  %v1792_v38 = vpop.eup %1791  ;;  %v578_v43 = vadd.f32 %v1517_v39, %v568_v37 }
 0x235   : > { %v560_v46 = vmul.f32 %v1792_v38, %v1973_v45  ;;  %v1756_v45 = vld [vmem:[%s2389_s8] sm:$0xff]  }
 0x236   : > { %v569_v40 = vmul.f32 %v1516_v34, %v559_v36  ;;  %v2224_v36 = vrot.slane %v616_v25, %v632_v28 }
 0x237   : > { %v1794_v41 = vpop.eup %1793  ;;  %v570_v51 = vmul.f32 %v1516_v34, %v560_v46 }
 0x238   : > { %v579_v44 = vadd.f32 %v1517_v39, %v569_v40  ;;  %v561_v42 = vmul.f32 %v1794_v41, %v1981_v50  ;;  %v1757_v50 = vld [vmem:[%s2389_s8 + $0xc0] sm:$0xff]  }
 0x239   : > { %v580_v52 = vadd.f32 %v1517_v39, %v570_v51  ;;  %1626 = vmatprep.subr.bf16.mxu0 %v1757_v50 }
 0x23a   : > { %v582_v47 = vpack.c.bf16 %v579_v44, %v578_v43  ;;  %v571_v48 = vmul.f32 %v1516_v34, %v561_v42 }
 0x23c   : > { %831 = vmatmul.mubr.bf16.vlgmr.msra.gmra.mrb[0].mxu1 %v582_v47  ;;  %884 = vmatmul.mubr.bf16.vlgmr.msra.gmra.mrb[4].mxu0 %v582_v47  ;;  %v581_v49 = vadd.f32 %v1517_v39, %v571_v48 }
 0x23d   : > { %840 = vmatprep.mubr.bf16.mxu1 %v1835_v13  ;;  %893 = vmatprep.mubr.bf16.mxu0 %v1835_v13  ;;  %v1780_v13 = vld [vmem:[%s2389_s8 + $0x30] sm:$0xff]  }
 0x23e   : > { %v583_v53 = vpack.c.bf16 %v581_v49, %v580_v52  ;;  %1599 = vmatpush3.bf16.msra.mxu1 %v1756_v45  ;;  %1627 = vmatpush3.bf16.msra.mxu0 %v2086_v55 }
 0x23f   : > { %1600 = vmatprep.subr.bf16.mxu1 %v1759_v56  ;;  %1628 = vmatprep.subr.bf16.mxu0 %v2098_v58 }
 0x242   : > { %1601 = vmatpush3.bf16.msra.mxu1 %v1760_v57  ;;  %1629 = vmatpush3.bf16.msra.mxu0 %v2103_v59 }
 0x243   : > { %1602 = vmatprep.subr.bf16.mxu1 %v1763_v60  ;;  %1630 = vmatprep.subr.bf16.mxu0 %v2116_v62 }
 0x244   : > { %841 = vmatmul.mubr.bf16.gmra.mrb[4].mxu1 %v583_v53  ;;  %894 = vmatmul.mubr.bf16.gmra.mrb[8].mxu0 %v583_v53 }
 0x246   : > { %1603 = vmatpush3.bf16.msra.mxu1 %v1764_v61  ;;  %1631 = vmatpush3.bf16.msra.mxu0 %v2122_v63 }
 0x247   : > { %1604 = vmatprep.subr.bf16.mxu1 %v1767_v0  ;;  %1632 = vmatprep.subr.bf16.mxu0 %v2134_v2 }
 0x24a   : > { %1605 = vmatpush3.bf16.msra.mxu1 %v1768_v1  ;;  %1633 = vmatpush3.bf16.msra.mxu0 %v2139_v3 }
 0x24b   : > { %1606 = vmatprep.subr.bf16.mxu1 %v1771_v4  ;;  %1634 = vmatprep.subr.bf16.mxu0 %v2152_v6 }
 0x24e   : > { %1607 = vmatpush3.bf16.msra.mxu1 %v1772_v5  ;;  %1635 = vmatpush3.bf16.msra.mxu0 %v2157_v7 }
 0x24f   : > { %1608 = vmatprep.subr.bf16.mxu1 %v1775_v8  ;;  %1636 = vmatprep.subr.bf16.mxu0 %v2170_v10 }
 0x252   : > { %1609 = vmatpush3.bf16.msra.mxu1 %v1776_v9  ;;  %1637 = vmatpush3.bf16.msra.mxu0 %v2175_v11 }
 0x253   : > { %1610 = vmatprep.subr.bf16.mxu1 %v1779_v12  ;;  %1638 = vmatprep.subr.bf16.mxu0 %v2187_v14 }
 0x256   : > { %1611 = vmatpush3.bf16.msra.mxu1 %v1780_v13  ;;  %1639 = vmatpush3.bf16.msra.mxu0 %v2193_v15 }
 0x257   : > { %1612 = vmatprep.subr.bf16.mxu1 %v1783_v16  ;;  %1640 = vmatprep.subr.bf16.mxu0 %v2202_v17 }
 0x25a   : > { %1613 = vmatpush3.bf16.msra.mxu1 %v1784_v18  ;;  %1641 = vmatpush3.bf16.msra.mxu0 %v2211_v19 }
 0x25b   : > { %1674 = vmatprep.subr.bf16.mxu1 %v1757_v50 }
 0x30f   : > { %v832_v34 = vpop.f32.mrb[0].mxu1  ;;  %v885_v35 = vpop.f32.mrb[4].mxu0 }
 0x310   : > { %v833_v37 = vadd.f32 %v832_v34, %v2218_v31  ;;  %v886_v38 = vadd.f32 %v885_v35, %v2220_v32  ;;  %v834_v39 = vpop.f32.mrb[1].mxu1  ;;  %v887_v40 = vpop.f32.mrb[5].mxu0 }
 0x311   : > { %v2229_v41 = vadd.f32 %v834_v39, %v2222_v33  ;;  %v836_v43 = vpop.f32.mrb[2].mxu1  ;;  %v889_v44 = vpop.f32.mrb[6].mxu0  ;;  %v2233_v48 = vadd.f32 %v887_v40, %v2224_v36 }
 0x312   : > { %v920_v46 = vmul.f32 0.044715, %v833_v37  ;;  %v922_v42 = vmul.f32 0.044715, %v886_v38  ;;  %v2236_v51 = vadd.f32 %v836_v43, %v2218_v31  ;;  %v2239_v49 = vadd.f32 %v889_v44, %v2220_v32  ;;  %v838_v52 = vpop.f32.mrb[3].mxu1  ;;  %v891_v53 = vpop.f32.mrb[7].mxu0 }
 0x313   : > { %v921_v47 = vmul.f32 0.044715, %v2229_v41  ;;  %v2242_v50 = vadd.f32 %v838_v52, %v2222_v33  ;;  %v2245_v57 = vmul.f32 0.5, %v833_v37  ;;  %v923_v4 = vmul.f32 0.044715, %v2233_v48 }
 0x314   : > { %v936_v54 = vmul.f32 %v920_v46, %v833_v37  ;;  %v938_v45 = vmul.f32 %v922_v42, %v886_v38  ;;  %v924_v56 = vmul.f32 0.044715, %v2236_v51  ;;  %v926_v0 = vmul.f32 0.044715, %v2239_v49 }
 0x315   : > { %v937_v1 = vmul.f32 %v921_v47, %v2229_v41  ;;  %v2252_v8 = vadd.f32 %v891_v53, %v2224_v36  ;;  %v925_v20 = vmul.f32 0.044715, %v2242_v50  ;;  %v2256_v24 = vmul.f32 0.5, %v886_v38 }
 0x316   : > { %v952_v60 = vmul.f32 %v936_v54, %v833_v37  ;;  %v954_v61 = vmul.f32 %v938_v45, %v886_v38  ;;  %v940_v5 = vmul.f32 %v924_v56, %v2236_v51  ;;  %v942_v18 = vmul.f32 %v926_v0, %v2239_v49 }
 0x317   : > { %v842_v9 = vpop.f32.mrb[4].mxu1  ;;  %v895_v12 = vpop.f32.mrb[8].mxu0  ;;  %v953_v46 = vmul.f32 %v937_v1, %v2229_v41  ;;  %v927_v47 = vmul.f32 0.044715, %v2252_v8  ;;  %v941_v53 = vmul.f32 %v925_v20, %v2242_v50 }
 0x318   : > { %v968_v13 = vadd.f32 %v952_v60, %v833_v37  ;;  %v970_v16 = vadd.f32 %v954_v61, %v886_v38  ;;  %v844_v21 = vpop.f32.mrb[5].mxu1  ;;  %v897_v22 = vpop.f32.mrb[9].mxu0  ;;  %v956_v25 = vmul.f32 %v940_v5, %v2236_v51  ;;  %v2260_v26 = vadd.f32 %v842_v9, %v2218_v31 }
 0x319   : > { %v2263_v28 = vadd.f32 %v895_v12, %v2220_v32  ;;  %v846_v34 = vpop.f32.mrb[6].mxu1  ;;  %v899_v35 = vpop.f32.mrb[10].mxu0  ;;  %v958_v40 = vmul.f32 %v942_v18, %v2239_v49  ;;  %v939_v38 = vmul.f32 %v923_v4, %v2233_v48  ;;  %v2275_v60 = vadd.f32 %v844_v21, %v2222_v33 }
 0x31a   : > { %v984_v37 = vmul.f32 0.7978846, %v968_v13  ;;  %v986_v39 = vmul.f32 0.7978846, %v970_v16  ;;  %v848_v43 = vpop.f32.mrb[7].mxu1  ;;  %v901_v44 = vpop.f32.mrb[11].mxu0  ;;  %v972_v42 = vadd.f32 %v956_v25, %v2236_v51  ;;  %v2279_v1 = vadd.f32 %v897_v22, %v2224_v36 }
 0x31b   : > { %v974_v52 = vadd.f32 %v958_v40, %v2239_v49  ;;  %v930_v54 = vmul.f32 0.044715, %v2263_v28  ;;  %v928_v56 = vmul.f32 0.044715, %v2260_v26  ;;  %v2282_v4 = vadd.f32 %v846_v34, %v2218_v31 }
 0x31c   : > { %1795 = vtanh.f32 %v984_v37  ;;  %v988_v45 = vmul.f32 0.7978846, %v972_v42  ;;  %v943_v5 = vmul.f32 %v927_v47, %v2252_v8  ;;  %v929_v9 = vmul.f32 0.044715, %v2275_v60 }
 0x31d   : > { %1797 = vtanh.f32 %v986_v39  ;;  %v990_v61 = vmul.f32 0.7978846, %v974_v52  ;;  %v946_v0 = vmul.f32 %v930_v54, %v2263_v28  ;;  %v2287_v12 = vadd.f32 %v899_v35, %v2220_v32 }
 0x31e   : > { %1799 = vtanh.f32 %v988_v45  ;;  %v957_v13 = vmul.f32 %v941_v53, %v2242_v50  ;;  %v931_v18 = vmul.f32 0.044715, %v2279_v1  ;;  %v944_v20 = vmul.f32 %v928_v56, %v2260_v26 }
 0x31f   : > { %1801 = vtanh.f32 %v990_v61  ;;  %v962_v16 = vmul.f32 %v946_v0, %v2263_v28  ;;  %v932_v31 = vmul.f32 0.044715, %v2282_v4  ;;  %v934_v21 = vmul.f32 0.044715, %v2287_v12 }
 0x320   : > { %v2296_v22 = vadd.f32 %v848_v43, %v2222_v33  ;;  %v945_v32 = vmul.f32 %v929_v9, %v2275_v60  ;;  %v947_v34 = vmul.f32 %v931_v18, %v2279_v1  ;;  %v2302_v35 = vadd.f32 %v901_v44, %v2224_v36 }
 0x321   : > { %v978_v25 = vadd.f32 %v962_v16, %v2263_v28  ;;  %v908_v37 = vmul.f32 0.5, %v2236_v51  ;;  %v910_v39 = vmul.f32 0.5, %v2239_v49  ;;  %v950_v40 = vmul.f32 %v934_v21, %v2287_v12 }
 0x322   : > { %v933_v42 = vmul.f32 0.044715, %v2296_v22  ;;  %v955_v33 = vmul.f32 %v939_v38, %v2233_v48  ;;  %v959_v43 = vmul.f32 %v943_v5, %v2252_v8  ;;  %v935_v52 = vmul.f32 0.044715, %v2302_v35 }
 0x323   : > { %v994_v47 = vmul.f32 0.7978846, %v978_v25  ;;  %v960_v53 = vmul.f32 %v944_v20, %v2260_v26  ;;  %v966_v36 = vmul.f32 %v950_v40, %v2287_v12  ;;  %v969_v51 = vadd.f32 %v953_v46, %v2229_v41 }
 0x324   : > { %v949_v44 = vmul.f32 %v933_v42, %v2296_v22  ;;  %v961_v54 = vmul.f32 %v945_v32, %v2275_v60  ;;  %v963_v45 = vmul.f32 %v947_v34, %v2279_v1  ;;  %v948_v38 = vmul.f32 %v932_v31, %v2282_v4 }
 0x325   : > { %v973_v56 = vadd.f32 %v957_v13, %v2242_v50  ;;  %1803 = vtanh.f32 %v994_v47  ;;  %v982_v0 = vadd.f32 %v966_v36, %v2287_v12  ;;  %v951_v5 = vmul.f32 %v935_v52, %v2302_v35 }
 0x326   : > { %v1796_v49 = vpop.eup %1795  ;;  %v985_v9 = vmul.f32 0.7978846, %v969_v51  ;;  %v965_v16 = vmul.f32 %v949_v44, %v2296_v22  ;;  %v971_v46 = vadd.f32 %v955_v33, %v2233_v48  ;;  %v975_v20 = vadd.f32 %v959_v43, %v2252_v8 }
 0x327   : > { %v1798_v61 = vpop.eup %1797  ;;  %v989_v18 = vmul.f32 0.7978846, %v973_v56  ;;  %v998_v25 = vmul.f32 0.7978846, %v982_v0  ;;  %v1016_v31 = vadd.f32 1.0, %v1796_v49  ;;  %v964_v47 = vmul.f32 %v948_v38, %v2282_v4 }
 0x328   : > { %v1800_v21 = vpop.eup %1799  ;;  %1805 = vtanh.f32 %v985_v9  ;;  %v1018_v32 = vadd.f32 1.0, %v1798_v61  ;;  %v987_v34 = vmul.f32 0.7978846, %v971_v46  ;;  %v991_v40 = vmul.f32 0.7978846, %v975_v20 }
 0x329   : > { %v1802_v13 = vpop.eup %1801  ;;  %1807 = vtanh.f32 %v989_v18  ;;  %v1020_v42 = vadd.f32 1.0, %v1800_v21  ;;  %v967_v52 = vmul.f32 %v951_v5, %v2302_v35  ;;  %v1032_v33 = vmul.f32 %v1016_v31, %v2245_v57 }
 0x32a   : > { %1809 = vtanh.f32 %v998_v25  ;;  %v1022_v36 = vadd.f32 1.0, %v1802_v13  ;;  %v2328_v44 = vmul.f32 %v1018_v32, %v2256_v24  ;;  %v977_v49 = vadd.f32 %v961_v54, %v2275_v60 }
 0x32b   : > { %1811 = vtanh.f32 %v987_v34  ;;  %v1036_v43 = vmul.f32 %v1020_v42, %v908_v37  ;;  %v981_v56 = vadd.f32 %v965_v16, %v2296_v22  ;;  %v976_v38 = vadd.f32 %v960_v53, %v2260_v26 }
 0x32c   : > { %1813 = vtanh.f32 %v991_v40  ;;  %v2330_v51 = vmul.f32 %v1022_v36, %v910_v39  ;;  %v993_v5 = vmul.f32 0.7978846, %v977_v49  ;;  %v980_v57 = vadd.f32 %v964_v47, %v2282_v4 }
 0x32d   : > { %v1048_v61 = vpack.c.bf16 %v1036_v43, %v1032_v33  ;;  %v997_v9 = vmul.f32 0.7978846, %v981_v56  ;;  %v992_v37 = vmul.f32 0.7978846, %v976_v38  ;;  %v979_v24 = vadd.f32 %v963_v45, %v2279_v1 }
 0x32e   : > { %v1050_v0 = vpack.c.bf16 %v2330_v51, %v2328_v44  ;;  %1815 = vtanh.f32 %v993_v5  ;;  %v996_v39 = vmul.f32 0.7978846, %v980_v57  ;;  %v983_v54 = vadd.f32 %v967_v52, %v2302_v35 }
 0x32f   : > { %v1804_v18 = vpop.eup %1803  ;;  %1817 = vtanh.f32 %v997_v9  ;;  %v995_v16 = vmul.f32 0.7978846, %v979_v24  ;;  %v905_v32 = vmul.f32 0.5, %v2229_v41  ;;  %v909_v13 = vmul.f32 0.5, %v2242_v50 }
 0x330   : > { %1819 = vtanh.f32 %v992_v37  ;;  %v999_v53 = vmul.f32 0.7978846, %v983_v54  ;;  %v1026_v25 = vadd.f32 1.0, %v1804_v18  ;;  %v914_v40 = vmul.f32 0.5, %v2263_v28 }
 0x331   : > { %1821 = vtanh.f32 %v996_v39  ;;  %v918_v42 = vmul.f32 0.5, %v2287_v12  ;;  %v907_v43 = vmul.f32 0.5, %v2233_v48  ;;  %v911_v51 = vmul.f32 0.5, %v2252_v8 }
 0x332   : > { %v1806_v46 = vpop.eup %1805  ;;  %1823 = vtanh.f32 %v995_v16  ;;  %v1042_v49 = vmul.f32 %v1026_v25, %v914_v40  ;;  %v913_v48 = vmul.f32 0.5, %v2275_v60  ;;  %v917_v8 = vmul.f32 0.5, %v2296_v22 }
 0x333   : > { %v1808_v20 = vpop.eup %1807  ;;  %v1017_v21 = vadd.f32 1.0, %v1806_v46  ;;  %1825 = vtanh.f32 %v999_v53  ;;  %v912_v54 = vmul.f32 0.5, %v2260_v26  ;;  %v915_v60 = vmul.f32 0.5, %v2279_v1 }
 0x334   : > { %v1810_v31 = vpop.eup %1809  ;;  %v1021_v45 = vadd.f32 1.0, %v1808_v20  ;;  %v916_v20 = vmul.f32 0.5, %v2282_v4  ;;  %v919_v22 = vmul.f32 0.5, %v2302_v35 }
 0x335   : > { %v1812_v34 = vpop.eup %1811  ;;  %v1030_v47 = vadd.f32 1.0, %v1810_v31  ;;  %v1033_v36 = vmul.f32 %v1017_v21, %v905_v32 }
 0x336   : > { %v1814_v52 = vpop.eup %1813  ;;  %v1037_v33 = vmul.f32 %v1021_v45, %v909_v13  ;;  %v1019_v44 = vadd.f32 1.0, %v1812_v34 }
 0x337   : > { %v1023_v41 = vadd.f32 1.0, %v1814_v52  ;;  %v1046_v50 = vmul.f32 %v1030_v47, %v918_v42 }
 0x338   : > { %v1049_v56 = vpack.c.bf16 %v1037_v33, %v1033_v36  ;;  %v1035_v38 = vmul.f32 %v1019_v44, %v907_v43  ;;  %v1816_v28 = vpop.eup %1815 }
 0x339   : > { %v1039_v5 = vmul.f32 %v1023_v41, %v911_v51  ;;  %v1054_v9 = vpack.c.bf16 %v1046_v50, %v1042_v49  ;;  %v1818_v12 = vpop.eup %1817  ;;  %v1025_v37 = vadd.f32 1.0, %v1816_v28 }
 0x33a   : > { %1344 = vmatprep.mubr.bf16.mxu1 %v1049_v56  ;;  %v1820_v24 = vpop.eup %1819  ;;  %v1029_v18 = vadd.f32 1.0, %v1818_v12 }
 0x33b   : > { %v1051_v57 = vpack.c.bf16 %v1039_v5, %v1035_v38  ;;  %1345 = vmatmul.mubr.bf16.vlgmr.msra.gmra.mrb[8].mxu1 %v1048_v61  ;;  %v1822_v39 = vpop.eup %1821  ;;  %v1024_v16 = vadd.f32 1.0, %v1820_v24  ;;  %v1041_v53 = vmul.f32 %v1025_v37, %v913_v48 }
 0x33c   : > { %1682 = vmatpush3.bf16.msra.mxu1 %v2086_v55  ;;  %v1824_v46 = vpop.eup %1823  ;;  %v1045_v61 = vmul.f32 %v1029_v18, %v917_v8  ;;  %v1028_v21 = vadd.f32 1.0, %v1822_v39 }
 0x33d   : > { %1393 = vmatprep.mubr.bf16.mxu0 %v1051_v57  ;;  %1675 = vmatprep.subr.bf16.mxu1 %v2098_v58  ;;  %v1826_v55 = vpop.eup %1825  ;;  %v1027_v25 = vadd.f32 1.0, %v1824_v46  ;;  %v1040_v58 = vmul.f32 %v1024_v16, %v912_v54 }
 0x33e   : > { %1394 = vmatmul.mubr.bf16.vlgmr.msra.gmra.mrb[12].mxu0 %v1050_v0  ;;  %v1053_v31 = vpack.c.bf16 %v1045_v61, %v1041_v53  ;;  %v1044_v32 = vmul.f32 %v1028_v21, %v916_v20  ;;  %v1031_v26 = vadd.f32 1.0, %v1826_v55 }
 0x33f   : > { %v1043_v13 = vmul.f32 %v1027_v25, %v915_v60 }
 0x340   : > { %1683 = vmatpush3.bf16.msra.mxu1 %v2103_v59  ;;  %1352 = vmatprep.mubr.bf16.mxu1 %v1053_v31  ;;  %v1052_v0 = vpack.c.bf16 %v1044_v32, %v1040_v58  ;;  %v1047_v45 = vmul.f32 %v1031_v26, %v919_v22 }
 0x341   : > { %1676 = vmatprep.subr.bf16.mxu1 %v2116_v62 }
 0x342   : > { %v1055_v4 = vpack.c.bf16 %v1047_v45, %v1043_v13 }
 0x343   : > { %1353 = vmatmul.mubr.bf16.gmra.mrb[12].mxu1 %v1052_v0 }
 0x344   : > { %1684 = vmatpush3.bf16.msra.mxu1 %v2122_v63  ;;  %1401 = vmatprep.mubr.bf16.mxu1 %v1055_v4 }
 0x345   : > { %1677 = vmatprep.subr.bf16.mxu1 %v2134_v2 }
 0x348   : > { %1685 = vmatpush3.bf16.msra.mxu1 %v2139_v3 }
 0x349   : > { %1678 = vmatprep.subr.bf16.mxu1 %v2152_v6 }
 0x34c   : > { %1686 = vmatpush3.bf16.msra.mxu1 %v2157_v7 }
 0x34d   : > { %1679 = vmatprep.subr.bf16.mxu1 %v2170_v10 }
 0x350   : > { %1687 = vmatpush3.bf16.msra.mxu1 %v2175_v11 }
 0x351   : > { %1680 = vmatprep.subr.bf16.mxu1 %v2187_v14 }
 0x354   : > { %1688 = vmatpush3.bf16.msra.mxu1 %v2193_v15  ;;  %v1582_v15 = vld [vmem:[%s2390_s9] ss:$0 sm:$0xff] }
 0x355   : > { %1681 = vmatprep.subr.bf16.mxu1 %v2202_v17 }
 0x358   : > { %1689 = vmatpush3.bf16.msra.mxu1 %v2211_v19 }
 0x35b   : > { %1402 = vmatmul.mubr.bf16.vlgmr.msra.gmra.mrb[16].mxu1 %v1054_v9 }
 0x40e   : > { %v1614_v59 = vpop.f32.mrb[8].mxu1 }
 0x40f   : > { %v1615_v62 = vpop.f32.mrb[9].mxu1 }
 0x410   : > { %v1616_v63 = vadd.f32 %v1615_v62, %v1614_v59  ;;  %v1617_v2 = vpop.f32.mrb[10].mxu1 }
 0x411   : > { %v1642_v3 = vpop.f32.mrb[12].mxu0  ;;  %v1618_v6 = vpop.f32.mrb[11].mxu1 }
 0x412   : > { %v1643_v7 = vpop.f32.mrb[13].mxu0  ;;  %v1619_v10 = vadd.f32 %v1618_v6, %v1617_v2 }
 0x413   : > { %v1644_v1 = vadd.f32 %v1643_v7, %v1642_v3  ;;  %v1645_v11 = vpop.f32.mrb[14].mxu0 }
 0x414   : > { %v1646_v35 = vpop.f32.mrb[15].mxu0 }
 0x415   : > { %v1396_v14 = vadd.f32 %v1644_v1, %v1616_v63  ;;  %v1647_v34 = vadd.f32 %v1646_v35, %v1645_v11 }
 0x416   : > { %v1620_v40 = vpop.f32.mrb[12].mxu1 }
 0x417   : > { %v1410_v17 = vadd.f32 %v1396_v14, %v1938_v27  ;;  %v1399_v19 = vadd.f32 %v1647_v34, %v1619_v10  ;;  %v1621_v42 = vpop.f32.mrb[13].mxu1 }
 0x418   : > { %v1622_v36 = vadd.f32 %v1621_v42, %v1620_v40  ;;  %v1623_v33 = vpop.f32.mrb[14].mxu1 }
 0x419   : > { %v1421_v47 = vadd.f32 %v1582_v15, %v1410_v17  ;;  %v1411_v52 = vadd.f32 %v1399_v19, %v1943_v30  ;;  %v1624_v43 = vpop.f32.mrb[15].mxu1 }
 0x41a   : > { %v1625_v51 = vadd.f32 %v1624_v43, %v1623_v33 }
 0x41b   : > { %1425 = vst [vmem:[%s379_s15] sm:$0xff] %v1421_v47  ;;  %v1422_v44 = vadd.f32 %v1582_v15, %v1411_v52 }
 0x41d   : > { %1426 = vst [vmem:[%s379_s15 + $0x8] sm:$0xff] %v1422_v44 }
 0x42e   : > { %v1648_v41 = vpop.f32.mrb[16].mxu1 }
 0x42f   : > { %v1649_v49 = vpop.f32.mrb[17].mxu1 }
 0x430   : > { %v1650_v27 = vadd.f32 %v1649_v49, %v1648_v41  ;;  %v1651_v50 = vpop.f32.mrb[18].mxu1 }
 0x431   : > { %v1652_v56 = vpop.f32.mrb[19].mxu1 }
 0x432   : > { %v1404_v38 = vadd.f32 %v1650_v27, %v1622_v36  ;;  %v1653_v5 = vadd.f32 %v1652_v56, %v1651_v50 }
 0x434   : > { %v1412_v9 = vadd.f32 %v1404_v38, %v1936_v23  ;;  %v1407_v28 = vadd.f32 %v1653_v5, %v1625_v51 }
 0x436   : > { %v1423_v12 = vadd.f32 %v1582_v15, %v1412_v9  ;;  %v1413_v30 = vadd.f32 %v1407_v28, %v1940_v29 }
 0x438   : > { %1427 = vst [vmem:[%s379_s15 + $0x10] sm:$0xff] %v1423_v12  ;;  %v1424_v57 = vadd.f32 %v1582_v15, %v1413_v30 }
 0x43a   : > { %1428 = vst [vmem:[%s379_s15 + $0x18] sm:$0xff] %v1424_v57 }
 0x43b PF: > { %s20_s13 = sadd.s32 1, %s1833_s13  }
 0x43c   : > { %p17_p4 = scmp.ge.s32.totalorder %s20_s13, 4  }
 0x43e   :  { %19 = sbr.rel (!%p17_p4) target bundleno = 1 (0x1), region = 93 }

</bundles_post_ra>
